<compile_context>
chip_gen: v6e
topology: v6e:2x2x1
jax: 0.10.0
libtpu: 0.0.40
codegen_flags: <defaults>
</compile_context>

<pallas_src>
import functools

import jax
import jax.numpy as jnp
from jax import lax
from jax.experimental import pallas as pl
from jax.experimental.pallas import tpu as pltpu


# ----------------------------------------------------------------------------
# activation helpers (kernel + pure-JAX reference)
# ----------------------------------------------------------------------------
def _hswish(x):
    return x * jnp.clip(x + 3.0, 0.0, 6.0) / 6.0


def _hsigmoid(x):
    return jnp.clip(x + 3.0, 0.0, 6.0) / 6.0


def _apply_act(y, act):
    if act == "relu":
        return jnp.maximum(y, 0.0)
    if act == "hard_swish":
        return _hswish(y)
    return y


def _fold_bn(gamma, beta, mean, var, eps=1e-5):
    scale = gamma / jnp.sqrt(var + eps)
    shift = beta - mean * scale
    return scale.astype(jnp.float32), shift.astype(jnp.float32)


# ----------------------------------------------------------------------------
# Fused kernel factory
# ----------------------------------------------------------------------------
def _make_fused_kernel(*, act, K, stride, pad, w_off, H, W, Ho, Wo, Hp, Wbuf,
                       use_se, shortcut, matmul_dtype):
    def kernel(*refs):
        if use_se:
            (x_ref, w0_ref, t0_ref, w1_ref, t1_ref,
             sew1_ref, seb1_ref, sew2_ref, seb2_ref,
             w2t_ref, t2_ref, o_ref, pad_ref) = refs
        else:
            (x_ref, w0_ref, t0_ref, w1_ref, t1_ref,
             w2t_ref, t2_ref, o_ref, pad_ref) = refs

        Cin = x_ref.shape[-1]
        num_mid = w0_ref.shape[-1]
        num_out = w2t_ref.shape[0]

        # ---- conv0: 1x1 matmul (BN scale pre-folded into w0) + shift + act --
        x2d = x_ref[0].reshape(H * W, Cin)                       # (H*W, Cin)
        h0 = jnp.dot(x2d.astype(matmul_dtype), w0_ref[...],
                     preferred_element_type=jnp.float32)
        h0 = _apply_act(h0 + t0_ref[...], act)                   # (H*W, num_mid) f32

        # ---- build padded activation in VMEM scratch -------------------------
        # Zero only the halo ring (cheap), every step; interior fully rewritten.
        if pad > 0:
            pad_ref[0:pad, :, :] = jnp.zeros((pad, Wbuf, num_mid), jnp.float32)
            pad_ref[pad + H:Hp, :, :] = jnp.zeros((pad, Wbuf, num_mid), jnp.float32)
            pad_ref[pad:pad + H, w_off - pad:w_off, :] = (
                jnp.zeros((H, pad, num_mid), jnp.float32))
            pad_ref[pad:pad + H, w_off + W:w_off + W + pad, :] = (
                jnp.zeros((H, pad, num_mid), jnp.float32))
        pad_ref[pad:pad + H, w_off:w_off + W, :] = h0.reshape(H, W, num_mid)

        # ---- depthwise KxK (BN scale pre-folded into w1) + shift + act -------
        w1_all = w1_ref[...]                                     # (K, K, num_mid) f32

        def rowi(ki):
            return pl.ds(ki, Ho) if stride == 1 else pl.ds(ki, Ho, stride=stride)

        def coli(kj):
            j0 = w_off - pad + kj
            return pl.ds(j0, Wo) if stride == 1 else pl.ds(j0, Wo, stride=stride)

        acc = pad_ref[rowi(0), coli(0), :] * w1_all[0, 0]        # init from tap (0,0)
        for ki in range(K):
            for kj in range(K):
                if ki == 0 and kj == 0:
                    continue
                acc = acc + pad_ref[rowi(ki), coli(kj), :] * w1_all[ki, kj]
        h1 = _apply_act(acc.reshape(Ho * Wo, num_mid) + t1_ref[...], act)

        # ---- SE -> folded into conv2 weight (no pass over the activation) ----
        w2t = w2t_ref[...]                                       # (num_out, num_mid)
        if use_se:
            pooled = jnp.mean(h1, axis=0, keepdims=True)         # (1, num_mid)
            a = jnp.dot(pooled.astype(matmul_dtype), sew1_ref[...],
                        preferred_element_type=jnp.float32) + seb1_ref[...]
            a = jnp.maximum(a, 0.0)
            a = jnp.dot(a.astype(matmul_dtype), sew2_ref[...],
                        preferred_element_type=jnp.float32) + seb2_ref[...]
            gate = _hsigmoid(a)                                  # (1, num_mid) f32
            w2t = (w2t.astype(jnp.float32) * gate).astype(matmul_dtype)

        # ---- conv2: 1x1 matmul (contract num_mid on both) + shift + shortcut -
        y = lax.dot_general(h1.astype(matmul_dtype), w2t,
                            dimension_numbers=(((1,), (1,)), ((), ())),
                            preferred_element_type=jnp.float32)  # (Ho*Wo, num_out)
        y = y + t2_ref[...]
        if shortcut:
            y = y + x2d.astype(jnp.float32)
        # Single store of the small final result (everything above stayed in
        # VMEM / vregs).
        o_ref[0] = y.reshape(Ho, Wo, num_out).astype(o_ref.dtype)

    return kernel


# ----------------------------------------------------------------------------
# Wrapper: ResidualUnit forward, NCHW in / NCHW out (like PyTorch, eval mode)
# ----------------------------------------------------------------------------
def residual_unit_pallas(x_nchw, p, *, stride, kernel_size, act, use_se,
                         matmul_dtype=jnp.bfloat16):
    N, Cin, H, W = x_nchw.shape
    num_mid = p["w0"].shape[0]
    num_out = p["w2"].shape[0]
    K = kernel_size
    pad = (K - 1) // 2
    shortcut = (Cin == num_out) and (stride == 1)

    Hp = H + 2 * pad
    Ho = (Hp - K) // stride + 1
    Wo = (W + 2 * pad - K) // stride + 1
    w_off = ((pad + 7) // 8) * 8          # sublane-aligned halo offset (>= pad)
    Wbuf = W + 2 * w_off

    # Fold BN (inference) into the weights (in f32, BEFORE any bf16 cast).
    s0, t0 = _fold_bn(*p["bn0"])
    s1, t1 = _fold_bn(*p["bn1"])
    s2, t2 = _fold_bn(*p["bn2"])
    w0m = (p["w0"][:, :, 0, 0].T * s0[None, :]).astype(matmul_dtype)      # (Cin, num_mid)
    w1kkc = (jnp.transpose(p["w1"][:, 0, :, :], (1, 2, 0)) * s1           # (K, K, num_mid)
             ).astype(jnp.float32)                                        # stays f32 (VPU)
    w2t = (p["w2"][:, :, 0, 0] * s2[:, None]).astype(matmul_dtype)        # (num_out, num_mid)

    x_nhwc = jnp.transpose(x_nchw, (0, 2, 3, 1))                          # NCHW -> NHWC

    def _b2(shape):
        return pl.BlockSpec(shape, lambda n: (0, 0))

    def _b3(shape):
        return pl.BlockSpec(shape, lambda n: (0, 0, 0))

    args = [x_nhwc, w0m, t0.reshape(1, -1), w1kkc, t1.reshape(1, -1)]
    in_specs = [
        pl.BlockSpec((1, H, W, Cin), lambda n: (n, 0, 0, 0)),
        _b2((Cin, num_mid)), _b2((1, num_mid)),
        _b3((K, K, num_mid)), _b2((1, num_mid)),
    ]
    if use_se:
        c_se = p["se_w1"].shape[0]
        se_w1 = p["se_w1"][:, :, 0, 0].T.astype(matmul_dtype)             # (num_mid, c_se)
        se_w2 = p["se_w2"][:, :, 0, 0].T.astype(matmul_dtype)             # (c_se, num_mid)
        args += [se_w1, p["se_b1"].reshape(1, -1).astype(jnp.float32),
                 se_w2, p["se_b2"].reshape(1, -1).astype(jnp.float32)]
        in_specs += [_b2((num_mid, c_se)), _b2((1, c_se)),
                     _b2((c_se, num_mid)), _b2((1, num_mid))]
    args += [w2t, t2.reshape(1, -1)]
    in_specs += [_b2((num_out, num_mid)), _b2((1, num_out))]

    kernel = _make_fused_kernel(
        act=act, K=K, stride=stride, pad=pad, w_off=w_off,
        H=H, W=W, Ho=Ho, Wo=Wo, Hp=Hp, Wbuf=Wbuf,
        use_se=use_se, shortcut=shortcut, matmul_dtype=matmul_dtype)

    out_nhwc = pl.pallas_call(
        kernel,
        out_shape=jax.ShapeDtypeStruct((N, Ho, Wo, num_out), x_nchw.dtype),
        grid=(N,),                        # batch axis -> both TCs on megacore parts
        in_specs=in_specs,
        out_specs=pl.BlockSpec((1, Ho, Wo, num_out), lambda n: (n, 0, 0, 0)),
        scratch_shapes=[pltpu.VMEM((Hp, Wbuf, num_mid), jnp.float32)],
        compiler_params=pltpu.CompilerParams(dimension_semantics=("parallel",)),
    )(*args)
    # TODO(synk): at large H*W*num_mid add a row-strip grid axis with a (K-1)
    #   halo, batch-block small images on single-TC parts, and raise
    #   vmem_limit_bytes explicitly.
    return jnp.transpose(out_nhwc, (0, 3, 1, 2))                          # NHWC -> NCHW


# ----------------------------------------------------------------------------
# Parameter construction (deterministic, synthetic)
# ----------------------------------------------------------------------------
def make_params(key, num_in, num_mid, num_out, kernel_size, use_se):
    ks = list(jax.random.split(key, 16))
    p = {}
    p["w0"] = jax.random.normal(ks[0], (num_mid, num_in, 1, 1), jnp.float32) * 0.2
    p["bn0"] = (
        1.0 + 0.1 * jax.random.normal(ks[1], (num_mid,), jnp.float32),
        0.1 * jax.random.normal(ks[2], (num_mid,), jnp.float32),
        0.1 * jax.random.normal(ks[3], (num_mid,), jnp.float32),
        jax.random.uniform(ks[4], (num_mid,), jnp.float32, 0.5, 1.5),
    )
    p["w1"] = jax.random.normal(ks[5], (num_mid, 1, kernel_size, kernel_size), jnp.float32) * 0.2
    p["bn1"] = (
        1.0 + 0.1 * jax.random.normal(ks[6], (num_mid,), jnp.float32),
        0.1 * jax.random.normal(ks[7], (num_mid,), jnp.float32),
        0.1 * jax.random.normal(ks[8], (num_mid,), jnp.float32),
        jax.random.uniform(ks[9], (num_mid,), jnp.float32, 0.5, 1.5),
    )
    if use_se:
        c_se = num_mid // 4
        p["se_w1"] = jax.random.normal(ks[10], (c_se, num_mid, 1, 1), jnp.float32) * 0.2
        p["se_b1"] = 0.1 * jax.random.normal(ks[11], (c_se,), jnp.float32)
        p["se_w2"] = jax.random.normal(ks[12], (num_mid, c_se, 1, 1), jnp.float32) * 0.2
        p["se_b2"] = 0.1 * jax.random.normal(ks[13], (num_mid,), jnp.float32)
    p["w2"] = jax.random.normal(ks[14], (num_out, num_mid, 1, 1), jnp.float32) * 0.2
    p["bn2"] = (
        1.0 + 0.1 * jax.random.normal(ks[15], (num_out,), jnp.float32),
        0.1 * jax.random.normal(ks[0], (num_out,), jnp.float32),
        0.1 * jax.random.normal(ks[1], (num_out,), jnp.float32),
        jax.random.uniform(ks[2], (num_out,), jnp.float32, 0.5, 1.5),
    )
    return p


# ----------------------------------------------------------------------------
# Pure-JAX reference (NCHW, mirrors the PyTorch module in eval mode)
# ----------------------------------------------------------------------------
def residual_unit_ref(x, p, *, stride, kernel_size, act, use_se):
    eps = 1e-5

    def bn(y, params):
        g, b, m, v = params
        return (y - m[None, :, None, None]) / jnp.sqrt(v + eps)[None, :, None, None] * g[
            None, :, None, None
        ] + b[None, :, None, None]

    pad = (kernel_size - 1) // 2
    dn = ("NCHW", "OIHW", "NCHW")
    num_mid = p["w0"].shape[0]
    num_out = p["w2"].shape[0]
    shortcut = (x.shape[1] == num_out) and (stride == 1)

    y = lax.conv_general_dilated(x, p["w0"], (1, 1), "VALID", dimension_numbers=dn)
    y = _apply_act(bn(y, p["bn0"]), act)

    y = lax.conv_general_dilated(
        y, p["w1"], (stride, stride), [(pad, pad), (pad, pad)],
        dimension_numbers=dn, feature_group_count=num_mid,
    )
    y = _apply_act(bn(y, p["bn1"]), act)

    if use_se:
        attn = jnp.mean(y, axis=(2, 3), keepdims=True)
        attn = jnp.einsum("ncij,oc->noij", attn, p["se_w1"][:, :, 0, 0]) + p["se_b1"][None, :, None, None]
        attn = jnp.maximum(attn, 0.0)
        attn = jnp.einsum("ncij,oc->noij", attn, p["se_w2"][:, :, 0, 0]) + p["se_b2"][None, :, None, None]
        attn = _hsigmoid(attn)
        y = y * attn

    y = lax.conv_general_dilated(y, p["w2"], (1, 1), "VALID", dimension_numbers=dn)
    y = bn(y, p["bn2"])
    if shortcut:
        y = x + y
    return y


if __name__ == "__main__":
    # Config: num_in=8, num_mid=16, num_out=8, stride=1, k=3,
    # act='hard_swish', use_se=True  -> shortcut path active.
    N, Cin, H, W = 2, 8, 16, 16
    num_mid, num_out = 16, 8
    stride, kernel_size = 1, 3
    act, use_se = "hard_swish", True

    key = jax.random.PRNGKey(0)
    kx, kp = jax.random.split(key)
    x = jax.random.normal(kx, (N, Cin, H, W), jnp.float32)
    params = make_params(kp, Cin, num_mid, num_out, kernel_size, use_se)

    ref = residual_unit_ref(
        x, params, stride=stride, kernel_size=kernel_size, act=act, use_se=use_se)
    assert ref.shape == (N, num_out, H, W)

    # 1) Tight check of the fusion itself (f32 MXU operands).
    fwd_f32 = jax.jit(functools.partial(
        residual_unit_pallas, stride=stride, kernel_size=kernel_size,
        act=act, use_se=use_se, matmul_dtype=jnp.float32))
    out_f32 = jax.block_until_ready(fwd_f32(x, params))
    assert out_f32.shape == ref.shape
    err_f32 = float(jnp.max(jnp.abs(out_f32 - ref)))
    assert jnp.allclose(out_f32, ref, atol=1e-3, rtol=1e-3), f"f32 max abs err {err_f32}"

    # 2) Default (bf16 MXU operands, f32 accumulation / post-matmul math).
    fwd = jax.jit(functools.partial(
        residual_unit_pallas, stride=stride, kernel_size=kernel_size,
        act=act, use_se=use_se))
    out = jax.block_until_ready(fwd(x, params))
    assert out.shape == ref.shape
    err_bf16 = float(jnp.max(jnp.abs(out - ref)))
    assert jnp.allclose(out, ref, atol=3e-2, rtol=3e-2), f"bf16 max abs err {err_bf16}"

    print("KERNEL_OK")
</pallas_src>

<mosaic_0001>
module attributes {stable_mosaic.version = 11 : i64} {
  func.func @kernel(%arg0: i32, %arg1: memref<1x16x16x8xf32, #tpu.memory_space<vmem>>, %arg2: memref<8x16xf32, #tpu.memory_space<vmem>>, %arg3: memref<1x16xf32, #tpu.memory_space<vmem>>, %arg4: memref<3x3x16xf32, #tpu.memory_space<vmem>>, %arg5: memref<1x16xf32, #tpu.memory_space<vmem>>, %arg6: memref<16x4xf32, #tpu.memory_space<vmem>>, %arg7: memref<1x4xf32, #tpu.memory_space<vmem>>, %arg8: memref<4x16xf32, #tpu.memory_space<vmem>>, %arg9: memref<1x16xf32, #tpu.memory_space<vmem>>, %arg10: memref<8x16xf32, #tpu.memory_space<vmem>>, %arg11: memref<1x8xf32, #tpu.memory_space<vmem>>, %arg12: memref<1x16x16x8xf32, #tpu.memory_space<vmem>>, %arg13: memref<18x32x16xf32, #tpu.memory_space<vmem>>) attributes {dimension_semantics = [#tpu.dimension_semantics<parallel>], iteration_bounds = array<i64: 2>, scalar_prefetch = 0 : i64, scratch_operands = 1 : i64, tpu.core_type = #tpu.core_type<tc>, window_params = [{transform_indices = @transform_0, window_bounds = array<i64: 1, 16, 16, 8>}, {pipeline_mode = #tpu.pipeline_mode<synchronous>, transform_indices = @transform_1, window_bounds = array<i64: 8, 16>}, {pipeline_mode = #tpu.pipeline_mode<synchronous>, transform_indices = @transform_2, window_bounds = array<i64: 1, 16>}, {pipeline_mode = #tpu.pipeline_mode<synchronous>, transform_indices = @transform_3, window_bounds = array<i64: 3, 3, 16>}, {pipeline_mode = #tpu.pipeline_mode<synchronous>, transform_indices = @transform_4, window_bounds = array<i64: 1, 16>}, {pipeline_mode = #tpu.pipeline_mode<synchronous>, transform_indices = @transform_5, window_bounds = array<i64: 16, 4>}, {pipeline_mode = #tpu.pipeline_mode<synchronous>, transform_indices = @transform_6, window_bounds = array<i64: 1, 4>}, {pipeline_mode = #tpu.pipeline_mode<synchronous>, transform_indices = @transform_7, window_bounds = array<i64: 4, 16>}, {pipeline_mode = #tpu.pipeline_mode<synchronous>, transform_indices = @transform_8, window_bounds = array<i64: 1, 16>}, {pipeline_mode = #tpu.pipeline_mode<synchronous>, transform_indices = @transform_9, window_bounds = array<i64: 8, 16>}, {pipeline_mode = #tpu.pipeline_mode<synchronous>, transform_indices = @transform_10, window_bounds = array<i64: 1, 8>}, {transform_indices = @transform_11, window_bounds = array<i64: 1, 16, 16, 8>}]} {
    %c0 = arith.constant 0 : index
    %c0_0 = arith.constant 0 : index
    %c0_1 = arith.constant 0 : index
    %c0_2 = arith.constant 0 : index
    %0 = vector.load %arg1[%c0, %c0_0, %c0_1, %c0_2] : memref<1x16x16x8xf32, #tpu.memory_space<vmem>>, vector<1x16x16x8xf32>
    %1 = vector.shape_cast %0 : vector<1x16x16x8xf32> to vector<16x16x8xf32>
    %2 = vector.shape_cast %1 : vector<16x16x8xf32> to vector<256x8xf32>
    %c0_3 = arith.constant 0 : index
    %c0_4 = arith.constant 0 : index
    %3 = vector.load %arg2[%c0_3, %c0_4] : memref<8x16xf32, #tpu.memory_space<vmem>>, vector<8x16xf32>
    %cst = arith.constant dense<0.000000e+00> : vector<256x16xf32>
    %4 = tpu.matmul %2, %3, %cst {dimension_numbers = #tpu.dot_dimension_numbers<[1], [0], [0], [1], [0, 0, 1, 1], [], []>} : vector<256x8xf32>, vector<8x16xf32>, vector<256x16xf32> -> vector<256x16xf32>
    %c0_5 = arith.constant 0 : index
    %c0_6 = arith.constant 0 : index
    %5 = vector.load %arg3[%c0_5, %c0_6] : memref<1x16xf32, #tpu.memory_space<vmem>>, vector<1x16xf32>
    %6 = vector.broadcast %5 : vector<1x16xf32> to vector<256x16xf32>
    %7 = arith.addf %4, %6 : vector<256x16xf32>
    %cst_7 = arith.constant 3.000000e+00 : f32
    %8 = vector.broadcast %cst_7 : f32 to vector<256x16xf32>
    %9 = arith.addf %7, %8 : vector<256x16xf32>
    %cst_8 = arith.constant 0.000000e+00 : f32
    %cst_9 = arith.constant 6.000000e+00 : f32
    %10 = vector.broadcast %cst_8 : f32 to vector<256x16xf32>
    %11 = arith.maximumf %10, %9 : vector<256x16xf32>
    %12 = vector.broadcast %cst_9 : f32 to vector<256x16xf32>
    %13 = arith.minimumf %12, %11 : vector<256x16xf32>
    %14 = arith.mulf %7, %13 : vector<256x16xf32>
    %cst_10 = arith.constant 6.000000e+00 : f32
    %15 = vector.broadcast %cst_10 : f32 to vector<256x16xf32>
    %16 = arith.divf %14, %15 : vector<256x16xf32>
    %cst_11 = arith.constant 0.000000e+00 : f32
    %17 = vector.broadcast %cst_11 : f32 to vector<1x32x16xf32>
    %c0_12 = arith.constant 0 : index
    %c0_13 = arith.constant 0 : index
    %c0_14 = arith.constant 0 : index
    %18 = vector.load %arg13[%c0_12, %c0_13, %c0_14] : memref<18x32x16xf32, #tpu.memory_space<vmem>>, vector<1x32x16xf32>
    tpu.vector_store %arg13[%c0_12, %c0_13, %c0_14], %17 {strides = array<i32>} : memref<18x32x16xf32, #tpu.memory_space<vmem>>, vector<1x32x16xf32>,
    %cst_15 = arith.constant 0.000000e+00 : f32
    %19 = vector.broadcast %cst_15 : f32 to vector<1x32x16xf32>
    %c17 = arith.constant 17 : index
    %c0_16 = arith.constant 0 : index
    %c0_17 = arith.constant 0 : index
    %20 = vector.load %arg13[%c17, %c0_16, %c0_17] : memref<18x32x16xf32, #tpu.memory_space<vmem>>, vector<1x32x16xf32>
    tpu.vector_store %arg13[%c17, %c0_16, %c0_17], %19 {strides = array<i32>} : memref<18x32x16xf32, #tpu.memory_space<vmem>>, vector<1x32x16xf32>,
    %cst_18 = arith.constant 0.000000e+00 : f32
    %21 = vector.broadcast %cst_18 : f32 to vector<16x1x16xf32>
    %c1 = arith.constant 1 : index
    %c7 = arith.constant 7 : index
    %c0_19 = arith.constant 0 : index
    %22 = vector.load %arg13[%c1, %c7, %c0_19] : memref<18x32x16xf32, #tpu.memory_space<vmem>>, vector<16x1x16xf32>
    tpu.vector_store %arg13[%c1, %c7, %c0_19], %21 {strides = array<i32>} : memref<18x32x16xf32, #tpu.memory_space<vmem>>, vector<16x1x16xf32>,
    %cst_20 = arith.constant 0.000000e+00 : f32
    %23 = vector.broadcast %cst_20 : f32 to vector<16x1x16xf32>
    %c1_21 = arith.constant 1 : index
    %c24 = arith.constant 24 : index
    %c0_22 = arith.constant 0 : index
    %24 = vector.load %arg13[%c1_21, %c24, %c0_22] : memref<18x32x16xf32, #tpu.memory_space<vmem>>, vector<16x1x16xf32>
    tpu.vector_store %arg13[%c1_21, %c24, %c0_22], %23 {strides = array<i32>} : memref<18x32x16xf32, #tpu.memory_space<vmem>>, vector<16x1x16xf32>,
    %25 = vector.shape_cast %16 : vector<256x16xf32> to vector<16x16x16xf32>
    %c1_23 = arith.constant 1 : index
    %c8 = arith.constant 8 : index
    %c0_24 = arith.constant 0 : index
    %26 = vector.load %arg13[%c1_23, %c8, %c0_24] : memref<18x32x16xf32, #tpu.memory_space<vmem>>, vector<16x16x16xf32>
    tpu.vector_store %arg13[%c1_23, %c8, %c0_24], %25 {strides = array<i32>} : memref<18x32x16xf32, #tpu.memory_space<vmem>>, vector<16x16x16xf32>,
    %c0_25 = arith.constant 0 : index
    %c0_26 = arith.constant 0 : index
    %c0_27 = arith.constant 0 : index
    %27 = vector.load %arg4[%c0_25, %c0_26, %c0_27] : memref<3x3x16xf32, #tpu.memory_space<vmem>>, vector<3x3x16xf32>
    %c0_28 = arith.constant 0 : index
    %c7_29 = arith.constant 7 : index
    %c0_30 = arith.constant 0 : index
    %28 = vector.load %arg13[%c0_28, %c7_29, %c0_30] : memref<18x32x16xf32, #tpu.memory_space<vmem>>, vector<16x16x16xf32>
    %29 = vector.extract_strided_slice %27 {offsets = [0, 0, 0], sizes = [1, 1, 16], strides = [1, 1, 1]} : vector<3x3x16xf32> to vector<1x1x16xf32>
    %30 = vector.shape_cast %29 : vector<1x1x16xf32> to vector<16xf32>
    %31 = vector.shape_cast %30 : vector<16xf32> to vector<1x1x16xf32>
    %32 = vector.broadcast %31 : vector<1x1x16xf32> to vector<16x16x16xf32>
    %33 = arith.mulf %28, %32 : vector<16x16x16xf32>
    %c0_31 = arith.constant 0 : index
    %c8_32 = arith.constant 8 : index
    %c0_33 = arith.constant 0 : index
    %34 = vector.load %arg13[%c0_31, %c8_32, %c0_33] : memref<18x32x16xf32, #tpu.memory_space<vmem>>, vector<16x16x16xf32>
    %35 = vector.extract_strided_slice %27 {offsets = [0, 1, 0], sizes = [1, 1, 16], strides = [1, 1, 1]} : vector<3x3x16xf32> to vector<1x1x16xf32>
    %36 = vector.shape_cast %35 : vector<1x1x16xf32> to vector<16xf32>
    %37 = vector.shape_cast %36 : vector<16xf32> to vector<1x1x16xf32>
    %38 = vector.broadcast %37 : vector<1x1x16xf32> to vector<16x16x16xf32>
    %39 = arith.mulf %34, %38 : vector<16x16x16xf32>
    %40 = arith.addf %33, %39 : vector<16x16x16xf32>
    %c0_34 = arith.constant 0 : index
    %c9 = arith.constant 9 : index
    %c0_35 = arith.constant 0 : index
    %41 = vector.load %arg13[%c0_34, %c9, %c0_35] : memref<18x32x16xf32, #tpu.memory_space<vmem>>, vector<16x16x16xf32>
    %42 = vector.extract_strided_slice %27 {offsets = [0, 2, 0], sizes = [1, 1, 16], strides = [1, 1, 1]} : vector<3x3x16xf32> to vector<1x1x16xf32>
    %43 = vector.shape_cast %42 : vector<1x1x16xf32> to vector<16xf32>
    %44 = vector.shape_cast %43 : vector<16xf32> to vector<1x1x16xf32>
    %45 = vector.broadcast %44 : vector<1x1x16xf32> to vector<16x16x16xf32>
    %46 = arith.mulf %41, %45 : vector<16x16x16xf32>
    %47 = arith.addf %40, %46 : vector<16x16x16xf32>
    %c1_36 = arith.constant 1 : index
    %c7_37 = arith.constant 7 : index
    %c0_38 = arith.constant 0 : index
    %48 = vector.load %arg13[%c1_36, %c7_37, %c0_38] : memref<18x32x16xf32, #tpu.memory_space<vmem>>, vector<16x16x16xf32>
    %49 = vector.extract_strided_slice %27 {offsets = [1, 0, 0], sizes = [1, 1, 16], strides = [1, 1, 1]} : vector<3x3x16xf32> to vector<1x1x16xf32>
    %50 = vector.shape_cast %49 : vector<1x1x16xf32> to vector<16xf32>
    %51 = vector.shape_cast %50 : vector<16xf32> to vector<1x1x16xf32>
    %52 = vector.broadcast %51 : vector<1x1x16xf32> to vector<16x16x16xf32>
    %53 = arith.mulf %48, %52 : vector<16x16x16xf32>
    %54 = arith.addf %47, %53 : vector<16x16x16xf32>
    %c1_39 = arith.constant 1 : index
    %c8_40 = arith.constant 8 : index
    %c0_41 = arith.constant 0 : index
    %55 = vector.load %arg13[%c1_39, %c8_40, %c0_41] : memref<18x32x16xf32, #tpu.memory_space<vmem>>, vector<16x16x16xf32>
    %56 = vector.extract_strided_slice %27 {offsets = [1, 1, 0], sizes = [1, 1, 16], strides = [1, 1, 1]} : vector<3x3x16xf32> to vector<1x1x16xf32>
    %57 = vector.shape_cast %56 : vector<1x1x16xf32> to vector<16xf32>
    %58 = vector.shape_cast %57 : vector<16xf32> to vector<1x1x16xf32>
    %59 = vector.broadcast %58 : vector<1x1x16xf32> to vector<16x16x16xf32>
    %60 = arith.mulf %55, %59 : vector<16x16x16xf32>
    %61 = arith.addf %54, %60 : vector<16x16x16xf32>
    %c1_42 = arith.constant 1 : index
    %c9_43 = arith.constant 9 : index
    %c0_44 = arith.constant 0 : index
    %62 = vector.load %arg13[%c1_42, %c9_43, %c0_44] : memref<18x32x16xf32, #tpu.memory_space<vmem>>, vector<16x16x16xf32>
    %63 = vector.extract_strided_slice %27 {offsets = [1, 2, 0], sizes = [1, 1, 16], strides = [1, 1, 1]} : vector<3x3x16xf32> to vector<1x1x16xf32>
    %64 = vector.shape_cast %63 : vector<1x1x16xf32> to vector<16xf32>
    %65 = vector.shape_cast %64 : vector<16xf32> to vector<1x1x16xf32>
    %66 = vector.broadcast %65 : vector<1x1x16xf32> to vector<16x16x16xf32>
    %67 = arith.mulf %62, %66 : vector<16x16x16xf32>
    %68 = arith.addf %61, %67 : vector<16x16x16xf32>
    %c2 = arith.constant 2 : index
    %c7_45 = arith.constant 7 : index
    %c0_46 = arith.constant 0 : index
    %69 = vector.load %arg13[%c2, %c7_45, %c0_46] : memref<18x32x16xf32, #tpu.memory_space<vmem>>, vector<16x16x16xf32>
    %70 = vector.extract_strided_slice %27 {offsets = [2, 0, 0], sizes = [1, 1, 16], strides = [1, 1, 1]} : vector<3x3x16xf32> to vector<1x1x16xf32>
    %71 = vector.shape_cast %70 : vector<1x1x16xf32> to vector<16xf32>
    %72 = vector.shape_cast %71 : vector<16xf32> to vector<1x1x16xf32>
    %73 = vector.broadcast %72 : vector<1x1x16xf32> to vector<16x16x16xf32>
    %74 = arith.mulf %69, %73 : vector<16x16x16xf32>
    %75 = arith.addf %68, %74 : vector<16x16x16xf32>
    %c2_47 = arith.constant 2 : index
    %c8_48 = arith.constant 8 : index
    %c0_49 = arith.constant 0 : index
    %76 = vector.load %arg13[%c2_47, %c8_48, %c0_49] : memref<18x32x16xf32, #tpu.memory_space<vmem>>, vector<16x16x16xf32>
    %77 = vector.extract_strided_slice %27 {offsets = [2, 1, 0], sizes = [1, 1, 16], strides = [1, 1, 1]} : vector<3x3x16xf32> to vector<1x1x16xf32>
    %78 = vector.shape_cast %77 : vector<1x1x16xf32> to vector<16xf32>
    %79 = vector.shape_cast %78 : vector<16xf32> to vector<1x1x16xf32>
    %80 = vector.broadcast %79 : vector<1x1x16xf32> to vector<16x16x16xf32>
    %81 = arith.mulf %76, %80 : vector<16x16x16xf32>
    %82 = arith.addf %75, %81 : vector<16x16x16xf32>
    %c2_50 = arith.constant 2 : index
    %c9_51 = arith.constant 9 : index
    %c0_52 = arith.constant 0 : index
    %83 = vector.load %arg13[%c2_50, %c9_51, %c0_52] : memref<18x32x16xf32, #tpu.memory_space<vmem>>, vector<16x16x16xf32>
    %84 = vector.extract_strided_slice %27 {offsets = [2, 2, 0], sizes = [1, 1, 16], strides = [1, 1, 1]} : vector<3x3x16xf32> to vector<1x1x16xf32>
    %85 = vector.shape_cast %84 : vector<1x1x16xf32> to vector<16xf32>
    %86 = vector.shape_cast %85 : vector<16xf32> to vector<1x1x16xf32>
    %87 = vector.broadcast %86 : vector<1x1x16xf32> to vector<16x16x16xf32>
    %88 = arith.mulf %83, %87 : vector<16x16x16xf32>
    %89 = arith.addf %82, %88 : vector<16x16x16xf32>
    %90 = vector.shape_cast %89 : vector<16x16x16xf32> to vector<256x16xf32>
    %c0_53 = arith.constant 0 : index
    %c0_54 = arith.constant 0 : index
    %91 = vector.load %arg5[%c0_53, %c0_54] : memref<1x16xf32, #tpu.memory_space<vmem>>, vector<1x16xf32>
    %92 = vector.broadcast %91 : vector<1x16xf32> to vector<256x16xf32>
    %93 = arith.addf %90, %92 : vector<256x16xf32>
    %cst_55 = arith.constant 3.000000e+00 : f32
    %94 = vector.broadcast %cst_55 : f32 to vector<256x16xf32>
    %95 = arith.addf %93, %94 : vector<256x16xf32>
    %cst_56 = arith.constant 0.000000e+00 : f32
    %cst_57 = arith.constant 6.000000e+00 : f32
    %96 = vector.broadcast %cst_56 : f32 to vector<256x16xf32>
    %97 = arith.maximumf %96, %95 : vector<256x16xf32>
    %98 = vector.broadcast %cst_57 : f32 to vector<256x16xf32>
    %99 = arith.minimumf %98, %97 : vector<256x16xf32>
    %100 = arith.mulf %93, %99 : vector<256x16xf32>
    %cst_58 = arith.constant 6.000000e+00 : f32
    %101 = vector.broadcast %cst_58 : f32 to vector<256x16xf32>
    %102 = arith.divf %100, %101 : vector<256x16xf32>
    %c0_59 = arith.constant 0 : index
    %c0_60 = arith.constant 0 : index
    %103 = vector.load %arg10[%c0_59, %c0_60] : memref<8x16xf32, #tpu.memory_space<vmem>>, vector<8x16xf32>
    %cst_61 = arith.constant dense<0.000000e+00> : vector<16xf32>
    %104 = vector.multi_reduction <add>, %102, %cst_61 [0] : vector<256x16xf32> to vector<16xf32>
    %105 = vector.shape_cast %104 : vector<16xf32> to vector<1x16xf32>
    %cst_62 = arith.constant 2.560000e+02 : f32
    %106 = vector.broadcast %cst_62 : f32 to vector<1x16xf32>
    %107 = arith.divf %105, %106 : vector<1x16xf32>
    %c0_63 = arith.constant 0 : index
    %c0_64 = arith.constant 0 : index
    %108 = vector.load %arg6[%c0_63, %c0_64] : memref<16x4xf32, #tpu.memory_space<vmem>>, vector<16x4xf32>
    %cst_65 = arith.constant dense<0.000000e+00> : vector<1x4xf32>
    %109 = tpu.matmul %107, %108, %cst_65 {dimension_numbers = #tpu.dot_dimension_numbers<[1], [0], [0], [1], [0, 0, 1, 1], [], []>} : vector<1x16xf32>, vector<16x4xf32>, vector<1x4xf32> -> vector<1x4xf32>
    %c0_66 = arith.constant 0 : index
    %c0_67 = arith.constant 0 : index
    %110 = vector.load %arg7[%c0_66, %c0_67] : memref<1x4xf32, #tpu.memory_space<vmem>>, vector<1x4xf32>
    %111 = arith.addf %109, %110 : vector<1x4xf32>
    %cst_68 = arith.constant 0.000000e+00 : f32
    %112 = vector.broadcast %cst_68 : f32 to vector<1x4xf32>
    %113 = arith.maximumf %111, %112 : vector<1x4xf32>
    %c0_69 = arith.constant 0 : index
    %c0_70 = arith.constant 0 : index
    %114 = vector.load %arg8[%c0_69, %c0_70] : memref<4x16xf32, #tpu.memory_space<vmem>>, vector<4x16xf32>
    %cst_71 = arith.constant dense<0.000000e+00> : vector<1x16xf32>
    %115 = tpu.matmul %113, %114, %cst_71 {dimension_numbers = #tpu.dot_dimension_numbers<[1], [0], [0], [1], [0, 0, 1, 1], [], []>} : vector<1x4xf32>, vector<4x16xf32>, vector<1x16xf32> -> vector<1x16xf32>
    %c0_72 = arith.constant 0 : index
    %c0_73 = arith.constant 0 : index
    %116 = vector.load %arg9[%c0_72, %c0_73] : memref<1x16xf32, #tpu.memory_space<vmem>>, vector<1x16xf32>
    %117 = arith.addf %115, %116 : vector<1x16xf32>
    %cst_74 = arith.constant 3.000000e+00 : f32
    %118 = vector.broadcast %cst_74 : f32 to vector<1x16xf32>
    %119 = arith.addf %117, %118 : vector<1x16xf32>
    %cst_75 = arith.constant 0.000000e+00 : f32
    %cst_76 = arith.constant 6.000000e+00 : f32
    %120 = vector.broadcast %cst_75 : f32 to vector<1x16xf32>
    %121 = arith.maximumf %120, %119 : vector<1x16xf32>
    %122 = vector.broadcast %cst_76 : f32 to vector<1x16xf32>
    %123 = arith.minimumf %122, %121 : vector<1x16xf32>
    %cst_77 = arith.constant 6.000000e+00 : f32
    %124 = vector.broadcast %cst_77 : f32 to vector<1x16xf32>
    %125 = arith.divf %123, %124 : vector<1x16xf32>
    %126 = vector.broadcast %125 : vector<1x16xf32> to vector<8x16xf32>
    %127 = arith.mulf %103, %126 : vector<8x16xf32>
    %cst_78 = arith.constant dense<0.000000e+00> : vector<256x8xf32>
    %128 = tpu.matmul %102, %127, %cst_78 {dimension_numbers = #tpu.dot_dimension_numbers<[1], [1], [0], [0], [0, 0, 1, 0], [], []>} : vector<256x16xf32>, vector<8x16xf32>, vector<256x8xf32> -> vector<256x8xf32>
    %c0_79 = arith.constant 0 : index
    %c0_80 = arith.constant 0 : index
    %129 = vector.load %arg11[%c0_79, %c0_80] : memref<1x8xf32, #tpu.memory_space<vmem>>, vector<1x8xf32>
    %130 = vector.broadcast %129 : vector<1x8xf32> to vector<256x8xf32>
    %131 = arith.addf %128, %130 : vector<256x8xf32>
    %132 = arith.addf %131, %2 : vector<256x8xf32>
    %133 = vector.shape_cast %132 : vector<256x8xf32> to vector<16x16x8xf32>
    %c0_81 = arith.constant 0 : index
    %c0_82 = arith.constant 0 : index
    %c0_83 = arith.constant 0 : index
    %c0_84 = arith.constant 0 : index
    %134 = vector.load %arg12[%c0_81, %c0_82, %c0_83, %c0_84] : memref<1x16x16x8xf32, #tpu.memory_space<vmem>>, vector<1x16x16x8xf32>
    %135 = vector.shape_cast %134 : vector<1x16x16x8xf32> to vector<16x16x8xf32>
    %136 = vector.shape_cast %133 : vector<16x16x8xf32> to vector<1x16x16x8xf32>
    tpu.vector_store %arg12[%c0_81, %c0_82, %c0_83, %c0_84], %136 {strides = array<i32>} : memref<1x16x16x8xf32, #tpu.memory_space<vmem>>, vector<1x16x16x8xf32>,
    return
  }
  func.func @transform_0(%arg0: i32) -> (i32, i32, i32, i32) {
    %c0_i32 = arith.constant 0 : i32
    %c0_i32_0 = arith.constant 0 : i32
    %c0_i32_1 = arith.constant 0 : i32
    %c0_i32_2 = arith.constant 0 : i32
    return %arg0, %c0_i32, %c0_i32_0, %c0_i32_1 : i32, i32, i32, i32
  }
  func.func @transform_1(%arg0: i32) -> (i32, i32) {
    %c0_i32 = arith.constant 0 : i32
    %c0_i32_0 = arith.constant 0 : i32
    %c0_i32_1 = arith.constant 0 : i32
    return %c0_i32, %c0_i32_0 : i32, i32
  }
  func.func @transform_2(%arg0: i32) -> (i32, i32) {
    %c0_i32 = arith.constant 0 : i32
    %c0_i32_0 = arith.constant 0 : i32
    %c0_i32_1 = arith.constant 0 : i32
    return %c0_i32, %c0_i32_0 : i32, i32
  }
  func.func @transform_3(%arg0: i32) -> (i32, i32, i32) {
    %c0_i32 = arith.constant 0 : i32
    %c0_i32_0 = arith.constant 0 : i32
    %c0_i32_1 = arith.constant 0 : i32
    %c0_i32_2 = arith.constant 0 : i32
    return %c0_i32, %c0_i32_0, %c0_i32_1 : i32, i32, i32
  }
  func.func @transform_4(%arg0: i32) -> (i32, i32) {
    %c0_i32 = arith.constant 0 : i32
    %c0_i32_0 = arith.constant 0 : i32
    %c0_i32_1 = arith.constant 0 : i32
    return %c0_i32, %c0_i32_0 : i32, i32
  }
  func.func @transform_5(%arg0: i32) -> (i32, i32) {
    %c0_i32 = arith.constant 0 : i32
    %c0_i32_0 = arith.constant 0 : i32
    %c0_i32_1 = arith.constant 0 : i32
    return %c0_i32, %c0_i32_0 : i32, i32
  }
  func.func @transform_6(%arg0: i32) -> (i32, i32) {
    %c0_i32 = arith.constant 0 : i32
    %c0_i32_0 = arith.constant 0 : i32
    %c0_i32_1 = arith.constant 0 : i32
    return %c0_i32, %c0_i32_0 : i32, i32
  }
  func.func @transform_7(%arg0: i32) -> (i32, i32) {
    %c0_i32 = arith.constant 0 : i32
    %c0_i32_0 = arith.constant 0 : i32
    %c0_i32_1 = arith.constant 0 : i32
    return %c0_i32, %c0_i32_0 : i32, i32
  }
  func.func @transform_8(%arg0: i32) -> (i32, i32) {
    %c0_i32 = arith.constant 0 : i32
    %c0_i32_0 = arith.constant 0 : i32
    %c0_i32_1 = arith.constant 0 : i32
    return %c0_i32, %c0_i32_0 : i32, i32
  }
  func.func @transform_9(%arg0: i32) -> (i32, i32) {
    %c0_i32 = arith.constant 0 : i32
    %c0_i32_0 = arith.constant 0 : i32
    %c0_i32_1 = arith.constant 0 : i32
    return %c0_i32, %c0_i32_0 : i32, i32
  }
  func.func @transform_10(%arg0: i32) -> (i32, i32) {
    %c0_i32 = arith.constant 0 : i32
    %c0_i32_0 = arith.constant 0 : i32
    %c0_i32_1 = arith.constant 0 : i32
    return %c0_i32, %c0_i32_0 : i32, i32
  }
  func.func @transform_11(%arg0: i32) -> (i32, i32, i32, i32) {
    %c0_i32 = arith.constant 0 : i32
    %c0_i32_0 = arith.constant 0 : i32
    %c0_i32_1 = arith.constant 0 : i32
    %c0_i32_2 = arith.constant 0 : i32
    return %arg0, %c0_i32, %c0_i32_0, %c0_i32_1 : i32, i32, i32, i32
  }
}

</mosaic_0001>

<bundles_post_ra>
// kernel: residual_unit_pallas.1
= control target key start
LH: loop header
LB: loop body
LE: loop exit
PB: predicated region body
PF: predicated region fallthrough
CT: control target
= control target key end

     0   :  { %s3126_s17 = smov 0   ;;  %s4434_s0 = inlined_call_operand.vmem [shape: f32[2,16,16,8], index: 0, kind: input, shape index: {}]   ;;  %s4435_s1 = inlined_call_operand.vmem [shape: f32[8,16], index: 1, kind: input, shape index: {}]   ;;  %s4436_s2 = inlined_call_operand.vmem [shape: f32[1,16], index: 2, kind: input, shape index: {}]   ;;  %s4437_s3 = inlined_call_operand.vmem [shape: f32[3,3,16], index: 3, kind: input, shape index: {}]   ;;  %s4438_s4 = inlined_call_operand.vmem [shape: f32[1,16], index: 4, kind: input, shape index: {}]   ;;  %s4439_s5 = inlined_call_operand.vmem [shape: f32[16,4], index: 5, kind: input, shape index: {}]   ;;  %s4440_s6 = inlined_call_operand.vmem [shape: f32[1,4], index: 6, kind: input, shape index: {}]   ;;  %s4441_s7 = inlined_call_operand.vmem [shape: f32[4,16], index: 7, kind: input, shape index: {}]   ;;  %s4442_s8 = inlined_call_operand.vmem [shape: f32[1,16], index: 8, kind: input, shape index: {}]   ;;  %s4443_s9 = inlined_call_operand.vmem [shape: f32[8,16], index: 9, kind: input, shape index: {}]   ;;  %s4444_s10 = inlined_call_operand.vmem [shape: f32[1,8], index: 10, kind: input, shape index: {}]   ;;  %s4445_s11 = inlined_call_operand.vmem [shape: f32[2,16,16,8], index: 11, kind: output, shape index: {}]  }
   0x1 LB: > { %s2745_s18 = sadd.s32 4294967295, %s3062_s17   ;;  %p2749_p0 = scmp.ge.s32.totalorder %s3062_s17, 1  ;;  %s3062_s17 = sphi %s3126_s17, %s21_s17  }
   0x2   : > { %p337_p1 = scmp.lt.s32.totalorder %s3062_s17, 3 }
   0x4   : > { %p338_p2 = pnand %p2749_p0, %p337_p1 }
   0x6   : > { %341 = sbr.rel (%p338_p2) target bundleno = 1161 (0x489), region = 64 }
   0xb   : > { %v419_v0 = vld [vmem:[%s4435_s1] sm:$0xff]  ;;  %p377_p3 = scmp.lt.s32.totalorder %s2745_s18, 1  ;;  %vm427_vm0 = vcmask 64512   ;;  %vm910_vm1 = vcmask 130048   ;;  %vm921_vm2 = vcmask 122880   ;;  %v4446_v33 = vmov 0.0  }
   0xc   : > { %2900 = vmatprep.subr.mxu0 %v419_v0  ;;  %911 = vst.msk [vmem:[#allocation2] sm:$0xff] %vm910_vm1, %v4446_v33  ;;  %912 = vst.msk [vmem:[#allocation2 + $0x8] sm:$0xff] %vm910_vm1, %v4446_v33  ;;  %2957 = vmatprep.subr.mxu1 %v4446_v33  ;;  %v1021_v34 = vlaneseq  ;;  %v3296_v35 = vld [vmem:[%s4436_s2] ss:$0 sm:$0xff]  ;;  %vm3065_vm3 = vmmov 0   ;;  %vm2212_vm4 = vcmask 1043456  }
   0xd   : > { %2901 = vmatpush3.msra.mxu0 %v419_v0  ;;  %s4501_s18 = smov (!%p377_p3, %s2745_s18), 1  ;;  %913 = vst.msk [vmem:[#allocation2 + $0x10] sm:$0xff] %vm910_vm1, %v4446_v33  ;;  %914 = vst.msk [vmem:[#allocation2 + $0x18] sm:$0xff] %vm910_vm1, %v4446_v33  ;;  %v986_v42 = vld [vmem:[%s4437_s3] sm:$0x7]  ;;  %vm2208_vm5 = vcmask 31744  }
   0xe   : > { %s2827_s21 = sshll.u32 %s4501_s18, 8  ;;  %916 = vst.msk [vmem:[#allocation2 + $0x220] sm:$0xff] %vm910_vm1, %v4446_v33  ;;  %917 = vst.msk [vmem:[#allocation2 + $0x228] sm:$0xff] %vm910_vm1, %v4446_v33  ;;  %2950 = vmatprep.subr.mxu0 %v4446_v33  ;;  %v1022_v36 = vshrl.u32 %v1021_v34, 7 }
   0xf   : > { %s3145_s24 = scalar_lea.vmem %s4434_s0, %s2827_s21  ;;  %918 = vst.msk [vmem:[#allocation2 + $0x230] sm:$0xff] %vm910_vm1, %v4446_v33  ;;  %919 = vst.msk [vmem:[#allocation2 + $0x238] sm:$0xff] %vm910_vm1, %v4446_v33  ;;  %s4302_s25 = scalar_lea.vmem %s4445_s11, %s2827_s21 }
  0x10   : > { %v387_v1 = vld [vmem:[%s3145_s24] sm:$0xff]  ;;  %v388_v2 = vld [vmem:[%s3145_s24 + $0x8] sm:$0xff]  ;;  %v389_v3 = vld [vmem:[%s3145_s24 + $0x10] sm:$0xff]  ;;  %938 = vst.msk [vmem:[#allocation2 + $0x38] sm:$0x1] %vm921_vm2, %v4446_v33  ;;  %v3299_v40 = vsub.s32 0, %v1022_v36 }
  0x11   : > { %2902 = vmatprep.mubr.msk.f32.mxu0 %vm427_vm0, %v387_v1  ;;  %v390_v4 = vld [vmem:[%s3145_s24 + $0x18] sm:$0xff]  ;;  %v391_v5 = vld [vmem:[%s3145_s24 + $0x20] sm:$0xff]  ;;  %v392_v6 = vld [vmem:[%s3145_s24 + $0x28] sm:$0xff]  ;;  %922 = vst.msk [vmem:[#allocation2 + $0x27] sm:$0x1] %vm921_vm2, %v4446_v33  ;;  %v3305_v44 = vsub.s32 1, %v1022_v36 }
  0x12   : > { %2903 = vmatmul.mubr.msk.f32.vlgmr.msra.gmra.mxu0 %vm427_vm0, %v388_v2  ;;  %v393_v7 = vld [vmem:[%s3145_s24 + $0x30] sm:$0xff]  ;;  %v394_v8 = vld [vmem:[%s3145_s24 + $0x38] sm:$0xff]  ;;  %v395_v9 = vld [vmem:[%s3145_s24 + $0x40] sm:$0xff]  ;;  %923 = vst.msk [vmem:[#allocation2 + $0x47] sm:$0x1] %vm921_vm2, %v4446_v33  ;;  %v3308_v49 = vsub.s32 2, %v1022_v36  ;;  %v3311_v50 = vrot.slane %v986_v42, %v3299_v40 }
  0x13   : > { %2905 = vmatprep.mubr.msk.f32.mxu0 %vm427_vm0, %v389_v3  ;;  %v396_v10 = vld [vmem:[%s3145_s24 + $0x48] sm:$0xff]  ;;  %v397_v11 = vld [vmem:[%s3145_s24 + $0x50] sm:$0xff]  ;;  %v398_v12 = vld [vmem:[%s3145_s24 + $0x58] sm:$0xff]  ;;  %924 = vst.msk [vmem:[#allocation2 + $0x67] sm:$0x1] %vm921_vm2, %v4446_v33  ;;  %v3315_v58 = vrot.slane %v986_v42, %v3305_v44 }
  0x14   : > { %v399_v13 = vld [vmem:[%s3145_s24 + $0x60] sm:$0xff]  ;;  %v400_v14 = vld [vmem:[%s3145_s24 + $0x68] sm:$0xff]  ;;  %v401_v15 = vld [vmem:[%s3145_s24 + $0x70] sm:$0xff]  ;;  %925 = vst.msk [vmem:[#allocation2 + $0x87] sm:$0x1] %vm921_vm2, %v4446_v33  ;;  %v3318_v2 = vrot.slane %v986_v42, %v3308_v49 }
  0x15   : > { %v402_v16 = vld [vmem:[%s3145_s24 + $0x78] sm:$0xff]  ;;  %v403_v17 = vld [vmem:[%s3145_s24 + $0x80] sm:$0xff]  ;;  %v404_v18 = vld [vmem:[%s3145_s24 + $0x88] sm:$0xff]  ;;  %926 = vst.msk [vmem:[#allocation2 + $0xa7] sm:$0x1] %vm921_vm2, %v4446_v33 }
  0x16   : > { %2906 = vmatmul.mubr.msk.f32.gmra.mxu0 %vm427_vm0, %v390_v4  ;;  %v405_v19 = vld [vmem:[%s3145_s24 + $0x90] sm:$0xff]  ;;  %v406_v20 = vld [vmem:[%s3145_s24 + $0x98] sm:$0xff]  ;;  %v407_v21 = vld [vmem:[%s3145_s24 + $0xa0] sm:$0xff]  ;;  %927 = vst.msk [vmem:[#allocation2 + $0xc7] sm:$0x1] %vm921_vm2, %v4446_v33 }
  0x17   : > { %2908 = vmatprep.mubr.msk.f32.mxu0 %vm427_vm0, %v391_v5  ;;  %v408_v22 = vld [vmem:[%s3145_s24 + $0xa8] sm:$0xff]  ;;  %v409_v23 = vld [vmem:[%s3145_s24 + $0xb0] sm:$0xff]  ;;  %v410_v24 = vld [vmem:[%s3145_s24 + $0xb8] sm:$0xff]  ;;  %928 = vst.msk [vmem:[#allocation2 + $0xe7] sm:$0x1] %vm921_vm2, %v4446_v33 }
  0x18   : > { %v411_v25 = vld [vmem:[%s3145_s24 + $0xc0] sm:$0xff]  ;;  %v412_v26 = vld [vmem:[%s3145_s24 + $0xc8] sm:$0xff]  ;;  %v413_v27 = vld [vmem:[%s3145_s24 + $0xd0] sm:$0xff]  ;;  %929 = vst.msk [vmem:[#allocation2 + $0x107] sm:$0x1] %vm921_vm2, %v4446_v33 }
  0x19   : > { %v414_v28 = vld [vmem:[%s3145_s24 + $0xd8] sm:$0xff]  ;;  %v415_v29 = vld [vmem:[%s3145_s24 + $0xe0] sm:$0xff]  ;;  %v416_v30 = vld [vmem:[%s3145_s24 + $0xe8] sm:$0xff]  ;;  %930 = vst.msk [vmem:[#allocation2 + $0x127] sm:$0x1] %vm921_vm2, %v4446_v33 }
  0x1a   : > { %2909 = vmatmul.mubr.msk.f32.gmra.mxu0 %vm427_vm0, %v392_v6  ;;  %v417_v31 = vld [vmem:[%s3145_s24 + $0xf0] sm:$0xff]  ;;  %v418_v32 = vld [vmem:[%s3145_s24 + $0xf8] sm:$0xff]  ;;  %931 = vst.msk [vmem:[#allocation2 + $0x147] sm:$0x1] %vm921_vm2, %v4446_v33  ;;  %932 = vst.msk [vmem:[#allocation2 + $0x167] sm:$0x1] %vm921_vm2, %v4446_v33 }
  0x1b   : > { %2911 = vmatprep.mubr.msk.f32.mxu0 %vm427_vm0, %v393_v7  ;;  %933 = vst.msk [vmem:[#allocation2 + $0x187] sm:$0x1] %vm921_vm2, %v4446_v33  ;;  %934 = vst.msk [vmem:[#allocation2 + $0x1a7] sm:$0x1] %vm921_vm2, %v4446_v33  ;;  %v989_v54 = vld [vmem:[#allocation2 + $0x7] sm:$0xff]  ;;  %v990_v55 = vld [vmem:[#allocation2 + $0xf] sm:$0xff] }
  0x1c   : > { %935 = vst.msk [vmem:[#allocation2 + $0x1c7] sm:$0x1] %vm921_vm2, %v4446_v33  ;;  %936 = vst.msk [vmem:[#allocation2 + $0x1e7] sm:$0x1] %vm921_vm2, %v4446_v33  ;;  %v1057_v62 = vld [vmem:[#allocation2 + $0x8] sm:$0xff]  ;;  %v1058_v63 = vld [vmem:[#allocation2 + $0x10] sm:$0xff]  ;;  %v1025_v3 = vmul.f32 %v3311_v50, %v989_v54  ;;  %v1026_v4 = vmul.f32 %v3311_v50, %v990_v55 }
  0x1d   : > { %937 = vst.msk [vmem:[#allocation2 + $0x207] sm:$0x1] %vm921_vm2, %v4446_v33  ;;  %939 = vst.msk [vmem:[#allocation2 + $0x58] sm:$0x1] %vm921_vm2, %v4446_v33 }
  0x1e   : > { %2912 = vmatmul.mubr.msk.f32.gmra.mxu0 %vm427_vm0, %v394_v8  ;;  %940 = vst.msk [vmem:[#allocation2 + $0x78] sm:$0x1] %vm921_vm2, %v4446_v33  ;;  %941 = vst.msk [vmem:[#allocation2 + $0x98] sm:$0x1] %vm921_vm2, %v4446_v33 }
  0x1f   : > { %2914 = vmatprep.mubr.msk.f32.mxu0 %vm427_vm0, %v395_v9  ;;  %942 = vst.msk [vmem:[#allocation2 + $0xb8] sm:$0x1] %vm921_vm2, %v4446_v33  ;;  %943 = vst.msk [vmem:[#allocation2 + $0xd8] sm:$0x1] %vm921_vm2, %v4446_v33 }
  0x20   : > { %944 = vst.msk [vmem:[#allocation2 + $0xf8] sm:$0x1] %vm921_vm2, %v4446_v33  ;;  %945 = vst.msk [vmem:[#allocation2 + $0x118] sm:$0x1] %vm921_vm2, %v4446_v33 }
  0x21   : > { %946 = vst.msk [vmem:[#allocation2 + $0x138] sm:$0x1] %vm921_vm2, %v4446_v33  ;;  %947 = vst.msk [vmem:[#allocation2 + $0x158] sm:$0x1] %vm921_vm2, %v4446_v33 }
  0x22   : > { %2915 = vmatmul.mubr.msk.f32.gmra.mxu0 %vm427_vm0, %v396_v10  ;;  %948 = vst.msk [vmem:[#allocation2 + $0x178] sm:$0x1] %vm921_vm2, %v4446_v33  ;;  %949 = vst.msk [vmem:[#allocation2 + $0x198] sm:$0x1] %vm921_vm2, %v4446_v33 }
  0x23   : > { %2917 = vmatprep.mubr.msk.f32.mxu0 %vm427_vm0, %v397_v11  ;;  %950 = vst.msk [vmem:[#allocation2 + $0x1b8] sm:$0x1] %vm921_vm2, %v4446_v33  ;;  %951 = vst.msk [vmem:[#allocation2 + $0x1d8] sm:$0x1] %vm921_vm2, %v4446_v33  ;;  %v1093_v11 = vmul.f32 %v3315_v58, %v1057_v62 }
  0x24   : > { %952 = vst.msk [vmem:[#allocation2 + $0x1f8] sm:$0x1] %vm921_vm2, %v4446_v33  ;;  %953 = vst.msk [vmem:[#allocation2 + $0x218] sm:$0x1] %vm921_vm2, %v4446_v33 }
  0x26   : > { %2918 = vmatmul.mubr.msk.f32.gmra.mxu0 %vm427_vm0, %v398_v12  ;;  %v1094_v12 = vmul.f32 %v3315_v58, %v1058_v63 }
  0x27   : > { %2920 = vmatprep.mubr.msk.f32.mxu0 %vm427_vm0, %v399_v13 }
  0x28   : > { %v1126_v34 = vadd.f32 %v1094_v12, %v1026_v4 }
  0x2a   : > { %2921 = vmatmul.mubr.msk.f32.gmra.mxu0 %vm427_vm0, %v400_v14 }
  0x2b   : > { %2923 = vmatprep.mubr.msk.f32.mxu0 %vm427_vm0, %v401_v15 }
  0x2e   : > { %2924 = vmatmul.mubr.msk.f32.gmra.mxu0 %vm427_vm0, %v402_v16 }
  0x2f   : > { %2926 = vmatprep.mubr.msk.f32.mxu0 %vm427_vm0, %v403_v17 }
  0x32   : > { %2927 = vmatmul.mubr.msk.f32.gmra.mxu0 %vm427_vm0, %v404_v18 }
  0x33   : > { %2929 = vmatprep.mubr.msk.f32.mxu0 %vm427_vm0, %v405_v19 }
  0x36   : > { %2930 = vmatmul.mubr.msk.f32.gmra.mxu0 %vm427_vm0, %v406_v20  ;;  %v1157_v20 = vld [vmem:[#allocation2 + $0x9] sm:$0xff] }
  0x37   : > { %2932 = vmatprep.mubr.msk.f32.mxu0 %vm427_vm0, %v407_v21  ;;  %v1158_v21 = vld [vmem:[#allocation2 + $0x11] sm:$0xff]  ;;  %v1193_v36 = vmul.f32 %v3318_v2, %v1157_v20 }
  0x3a   : > { %2933 = vmatmul.mubr.msk.f32.gmra.mxu0 %vm427_vm0, %v408_v22 }
  0x3b   : > { %2935 = vmatprep.mubr.msk.f32.mxu0 %vm427_vm0, %v409_v23 }
  0x3e   : > { %2936 = vmatmul.mubr.msk.f32.gmra.mxu0 %vm427_vm0, %v410_v24 }
  0x3f   : > { %2938 = vmatprep.mubr.msk.f32.mxu0 %vm427_vm0, %v411_v25 }
  0x42   : > { %2939 = vmatmul.mubr.msk.f32.gmra.mxu0 %vm427_vm0, %v412_v26 }
  0x43   : > { %2941 = vmatprep.mubr.msk.f32.mxu0 %vm427_vm0, %v413_v27 }
  0x46   : > { %2942 = vmatmul.mubr.msk.f32.gmra.mxu0 %vm427_vm0, %v414_v28  ;;  %v987_v28 = vld [vmem:[%s4437_s3 + $0x4] sm:$0x7] }
  0x47   : > { %2944 = vmatprep.mubr.msk.f32.mxu0 %vm427_vm0, %v415_v29  ;;  %v1125_v29 = vadd.f32 %v1093_v11, %v1025_v3 }
  0x4a   : > { %2945 = vmatmul.mubr.msk.f32.gmra.mxu0 %vm427_vm0, %v416_v30 }
  0x4b   : > { %2947 = vmatprep.mubr.msk.f32.mxu0 %vm427_vm0, %v417_v31 }
  0x4e   : > { %2948 = vmatmul.mubr.msk.f32.gmra.mxu0 %vm427_vm0, %v418_v32 }
  0xd2   : > { %v2904_v37 = vpop.f32.mrf.mxu0 }
  0xd3   : > { %v596_v38 = vadd.f32 %v2904_v37, %v3296_v35  ;;  %v1194_v37 = vmul.f32 %v3318_v2, %v1158_v21 }
  0xd4   : > { %v590_v39 = vpop.f32.mrf.mxu0 }
  0xd5   : > { %v750_v41 = vadd.f32 3.0, %v596_v38  ;;  %v591_v43 = vadd.f32 %v3296_v35, %v590_v39 }
  0xd6   : > { %v2907_v45 = vpop.f32.mrf.mxu0 }
  0xd7   : > { %v782_v46 = vmax.f32 %v750_v41, 0.0  ;;  %v749_v47 = vadd.f32 3.0, %v591_v43  ;;  %v606_v48 = vadd.f32 %v2907_v45, %v3296_v35  ;;  %v988_v41 = vld [vmem:[%s4437_s3 + $0x8] sm:$0x7] }
  0xd8   : > { %v600_v51 = vpop.f32.mrf.mxu0 }
  0xd9   : > { %v814_v52 = vmin.f32 %v782_v46, 6.0  ;;  %v781_v53 = vmax.f32 %v749_v47, 0.0  ;;  %v752_v56 = vadd.f32 3.0, %v606_v48  ;;  %v601_v57 = vadd.f32 %v3296_v35, %v600_v51 }
  0xda   : > { %v2910_v59 = vpop.f32.mrf.mxu0  ;;  %v3345_v46 = vrot.slane %v987_v28, %v3305_v44  ;;  %v3348_v47 = vrot.slane %v987_v28, %v3308_v49 }
  0xdb   : > { %v846_v60 = vmul.f32 %v814_v52, %v596_v38  ;;  %v813_v61 = vmin.f32 %v781_v53, 6.0  ;;  %v784_v0 = vmax.f32 %v752_v56, 0.0  ;;  %v751_v1 = vadd.f32 3.0, %v601_v57 }
  0xdc   : > { %v616_v5 = vadd.f32 %v2910_v59, %v3296_v35  ;;  %v610_v6 = vpop.f32.mrf.mxu0  ;;  %v1225_v56 = vadd.f32 %v1193_v36, %v1125_v29  ;;  %v3359_v59 = vrot.slane %v988_v41, %v3305_v44 }
  0xdd   : > { %v879_v7 = vmul.f32 0.16666667, %v846_v60  ;;  %v845_v8 = vmul.f32 %v813_v61, %v591_v43  ;;  %v816_v9 = vmin.f32 %v784_v0, 6.0  ;;  %v783_v10 = vmax.f32 %v751_v1, 0.0 }
  0xde   : > { %v754_v13 = vadd.f32 3.0, %v616_v5  ;;  %v611_v14 = vadd.f32 %v3296_v35, %v610_v6  ;;  %v2913_v15 = vpop.f32.mrf.mxu0  ;;  %v3362_v60 = vrot.slane %v988_v41, %v3308_v49  ;;  %v3366_v1 = vrot.slane %v988_v41, %v3299_v40 }
  0xdf   : > { %955 = vst.msk [vmem:[#allocation2 + $0x30] sm:$0xff] %vm910_vm1, %v879_v7  ;;  %v878_v16 = vmul.f32 0.16666667, %v845_v8  ;;  %v848_v17 = vmul.f32 %v816_v9, %v606_v48  ;;  %v815_v18 = vmin.f32 %v783_v10, 6.0  ;;  %v3328_v19 = vadd.f32 %v2913_v15, %v3296_v35 }
  0xe0   : > { %v786_v22 = vmax.f32 %v754_v13, 0.0  ;;  %v753_v23 = vadd.f32 3.0, %v611_v14  ;;  %v620_v24 = vpop.f32.mrf.mxu0  ;;  %v3351_v48 = vrot.slane %v987_v28, %v3299_v40 }
  0xe1   : > { %954 = vst.msk [vmem:[#allocation2 + $0x28] sm:$0xff] %vm910_vm1, %v878_v16  ;;  %v881_v25 = vmul.f32 0.16666667, %v848_v17  ;;  %v847_v26 = vmul.f32 %v815_v18, %v601_v57  ;;  %v756_v27 = vadd.f32 3.0, %v3328_v19  ;;  %v3336_v32 = vadd.f32 %v3296_v35, %v620_v24 }
  0xe2   : > { %v818_v30 = vmin.f32 %v786_v22, 6.0  ;;  %v785_v31 = vmax.f32 %v753_v23, 0.0  ;;  %v2916_v39 = vpop.f32.mrf.mxu0  ;;  %v1226_v57 = vadd.f32 %v1194_v37, %v1126_v34 }
  0xe3   : > { %957 = vst.msk [vmem:[#allocation2 + $0x50] sm:$0xff] %vm910_vm1, %v881_v25  ;;  %v880_v38 = vmul.f32 0.16666667, %v847_v26  ;;  %v788_v45 = vmax.f32 %v756_v27, 0.0  ;;  %v755_v54 = vadd.f32 3.0, %v3336_v32  ;;  %v3356_v55 = vadd.f32 %v2916_v39, %v3296_v35 }
  0xe4   : > { %v850_v42 = vmul.f32 %v818_v30, %v616_v5  ;;  %v817_v43 = vmin.f32 %v785_v31, 6.0  ;;  %v630_v9 = vpop.f32.mrf.mxu0 }
  0xe5   : > { %956 = vst.msk [vmem:[#allocation2 + $0x48] sm:$0xff] %vm910_vm1, %v880_v38  ;;  %v820_v4 = vmin.f32 %v788_v45, 6.0  ;;  %v787_v12 = vmax.f32 %v755_v54, 0.0  ;;  %v3377_v13 = vadd.f32 3.0, %v3356_v55  ;;  %v3383_v24 = vadd.f32 %v3296_v35, %v630_v9 }
  0xe6   : > { %v1060_v51 = vld [vmem:[#allocation2 + $0x30] sm:$0xff]  ;;  %v883_v52 = vmul.f32 0.16666667, %v850_v42  ;;  %v849_v53 = vmul.f32 %v817_v43, %v611_v14  ;;  %v2919_v34 = vpop.f32.mrf.mxu0 }
  0xe7   : > { %v1096_v61 = vmul.f32 %v3315_v58, %v1060_v51  ;;  %v1160_v5 = vld [vmem:[#allocation2 + $0x31] sm:$0xff]  ;;  %v1394_v20 = vmul.f32 %v3345_v46, %v1060_v51  ;;  %v3390_v39 = vmul.f32 %v820_v4, %v3328_v19  ;;  %v3393_v45 = vmin.f32 %v787_v12, 6.0 }
  0xe8   : > { %v991_v62 = vld [vmem:[#allocation2 + $0x27] sm:$0xff]  ;;  %v992_v63 = vld [vmem:[#allocation2 + $0x2f] sm:$0xff]  ;;  %959 = vst.msk [vmem:[#allocation2 + $0x70] sm:$0xff] %vm910_vm1, %v883_v52  ;;  %v882_v3 = vmul.f32 0.16666667, %v849_v53  ;;  %v1196_v18 = vmul.f32 %v3318_v2, %v1160_v5  ;;  %v1494_v25 = vmul.f32 %v3348_v47, %v1160_v5  ;;  %v3399_v54 = vadd.f32 %v2919_v34, %v3296_v35 }
  0xe9   : > { %v1059_v0 = vld [vmem:[#allocation2 + $0x28] sm:$0xff]  ;;  %v1027_v6 = vmul.f32 %v3311_v50, %v991_v62  ;;  %v1028_v44 = vmul.f32 %v3311_v50, %v992_v63  ;;  %v1293_v8 = vmul.f32 %v3351_v48, %v991_v62  ;;  %v1294_v11 = vmul.f32 %v3351_v48, %v992_v63 }
  0xea   : > { %v1095_v49 = vmul.f32 %v3315_v58, %v1059_v0  ;;  %v1159_v7 = vld [vmem:[#allocation2 + $0x29] sm:$0xff]  ;;  %958 = vst.msk [vmem:[#allocation2 + $0x68] sm:$0xff] %vm910_vm1, %v882_v3  ;;  %v1393_v17 = vmul.f32 %v3345_v46, %v1059_v0  ;;  %v1162_v30 = vld [vmem:[#allocation2 + $0x51] sm:$0xff] }
  0xeb   : > { %v1195_v10 = vmul.f32 %v3318_v2, %v1159_v7  ;;  %v1128_v15 = vadd.f32 %v1096_v61, %v1028_v44  ;;  %v1325_v16 = vadd.f32 %v1293_v8, %v1225_v56  ;;  %v1326_v21 = vadd.f32 %v1294_v11, %v1226_v57  ;;  %v1062_v29 = vld [vmem:[#allocation2 + $0x50] sm:$0xff] }
  0xec   : > { %v1127_v14 = vadd.f32 %v1095_v49, %v1027_v6  ;;  %v993_v22 = vld [vmem:[#allocation2 + $0x47] sm:$0xff]  ;;  %v1493_v28 = vmul.f32 %v3348_v47, %v1159_v7  ;;  %v994_v31 = vld [vmem:[#allocation2 + $0x4f] sm:$0xff]  ;;  %v1098_v51 = vmul.f32 %v3315_v58, %v1062_v29  ;;  %v1198_v52 = vmul.f32 %v3318_v2, %v1162_v30 }
  0xed   : > { %v1061_v23 = vld [vmem:[#allocation2 + $0x48] sm:$0xff]  ;;  %v1425_v27 = vadd.f32 %v1393_v17, %v1325_v16  ;;  %v1426_v36 = vadd.f32 %v1394_v20, %v1326_v21  ;;  %v1029_v37 = vmul.f32 %v3311_v50, %v993_v22  ;;  %v1228_v42 = vadd.f32 %v1196_v18, %v1128_v15 }
  0xee   : > { %v1227_v26 = vadd.f32 %v1195_v10, %v1127_v14  ;;  %v1097_v38 = vmul.f32 %v3315_v58, %v1061_v23  ;;  %v1295_v43 = vmul.f32 %v3351_v48, %v993_v22  ;;  %v1296_v53 = vmul.f32 %v3351_v48, %v994_v31  ;;  %v1161_v57 = vld [vmem:[#allocation2 + $0x49] sm:$0xff] }
  0xef   : > { %v1525_v41 = vadd.f32 %v1493_v28, %v1425_v27  ;;  %v1030_v56 = vmul.f32 %v3311_v50, %v994_v31  ;;  %v1526_v61 = vadd.f32 %v1494_v25, %v1426_v36  ;;  %v1594_v62 = vmul.f32 %v3366_v1, %v993_v22  ;;  %v1064_v11 = vld [vmem:[#allocation2 + $0x70] sm:$0xff] }
  0xf0   : > { %v1327_v19 = vadd.f32 %v1295_v43, %v1227_v26  ;;  %v1129_v63 = vadd.f32 %v1097_v38, %v1029_v37  ;;  %v1328_v0 = vadd.f32 %v1296_v53, %v1228_v42  ;;  %v1395_v3 = vmul.f32 %v3345_v46, %v1061_v23  ;;  %v1164_v12 = vld [vmem:[#allocation2 + $0x71] sm:$0xff] }
  0xf1   : > { %v1595_v4 = vmul.f32 %v3366_v1, %v994_v31  ;;  %v1396_v5 = vmul.f32 %v3345_v46, %v1062_v29  ;;  %v1496_v6 = vmul.f32 %v3348_v47, %v1162_v30  ;;  %v1626_v44 = vadd.f32 %v1594_v62, %v1525_v41  ;;  %v995_v25 = vld [vmem:[#allocation2 + $0x67] sm:$0xff]  ;;  %v996_v26 = vld [vmem:[#allocation2 + $0x6f] sm:$0xff] }
  0xf2   : > { %v1694_v49 = vmul.f32 %v3359_v59, %v1061_v23  ;;  %v1695_v7 = vmul.f32 %v3359_v59, %v1062_v29  ;;  %v1197_v8 = vmul.f32 %v3318_v2, %v1161_v57  ;;  %v1427_v9 = vadd.f32 %v1395_v3, %v1327_v19  ;;  %v3416_v23 = vld [vmem:[%s4438_s4] ss:$0 sm:$0xff]  ;;  %v1063_v31 = vld [vmem:[#allocation2 + $0x68] sm:$0xff] }
  0xf3   : > { %v1627_v10 = vadd.f32 %v1595_v4, %v1526_v61  ;;  %v1795_v14 = vmul.f32 %v3362_v60, %v1162_v30  ;;  %v1130_v15 = vadd.f32 %v1098_v51, %v1030_v56  ;;  %v1794_v17 = vmul.f32 %v3362_v60, %v1161_v57  ;;  %v1163_v41 = vld [vmem:[#allocation2 + $0x69] sm:$0xff] }
  0xf4   : > { %v1726_v16 = vadd.f32 %v1694_v49, %v1626_v44  ;;  %v1229_v18 = vadd.f32 %v1197_v8, %v1129_v63  ;;  %v1428_v20 = vadd.f32 %v1396_v5, %v1328_v0  ;;  %v1495_v21 = vmul.f32 %v3348_v47, %v1161_v57 }
  0xf5   : > { %v1727_v22 = vadd.f32 %v1695_v7, %v1627_v10  ;;  %v1100_v28 = vmul.f32 %v3315_v58, %v1064_v11  ;;  %v3420_v29 = vmul.f32 %v3318_v2, %v1164_v12  ;;  %v1398_v30 = vmul.f32 %v3345_v46, %v1064_v11 }
  0xf6   : > { %v1826_v27 = vadd.f32 %v1794_v17, %v1726_v16  ;;  %v1527_v34 = vadd.f32 %v1495_v21, %v1427_v9  ;;  %v3424_v37 = vmul.f32 %v3348_v47, %v1164_v12  ;;  %v1697_v38 = vmul.f32 %v3359_v59, %v1064_v11 }
  0xf7   : > { %v1827_v36 = vadd.f32 %v1795_v14, %v1727_v22  ;;  %v1797_v43 = vmul.f32 %v3362_v60, %v1164_v12  ;;  %v1031_v51 = vmul.f32 %v3311_v50, %v995_v25  ;;  %v1032_v53 = vmul.f32 %v3311_v50, %v996_v26 }
  0xf8   : > { %v1865_v42 = vadd.f32 %v3416_v23, %v1826_v27  ;;  %v1099_v57 = vmul.f32 %v3315_v58, %v1063_v31  ;;  %v1297_v19 = vmul.f32 %v3351_v48, %v995_v25  ;;  %v1528_v61 = vadd.f32 %v1496_v6, %v1428_v20 }
  0xf9   : > { %v1866_v56 = vadd.f32 %v3416_v23, %v1827_v36  ;;  %v1199_v63 = vmul.f32 %v3318_v2, %v1163_v41  ;;  %v1596_v0 = vmul.f32 %v3366_v1, %v995_v25  ;;  %v1597_v3 = vmul.f32 %v3366_v1, %v996_v26 }
  0xfa   : > { %v1897_v62 = vadd.f32 3.0, %v1865_v42  ;;  %v1230_v5 = vadd.f32 %v1198_v52, %v1130_v15  ;;  %v1298_v44 = vmul.f32 %v3351_v48, %v996_v26  ;;  %v1397_v49 = vmul.f32 %v3345_v46, %v1063_v31  ;;  %v640_v15 = vpop.f32.mrf.mxu0 }
  0xfb   : > { %v1898_v4 = vadd.f32 3.0, %v1866_v56  ;;  %v1628_v8 = vadd.f32 %v1596_v0, %v1527_v34  ;;  %v1629_v9 = vadd.f32 %v1597_v3, %v1528_v61  ;;  %v1696_v10 = vmul.f32 %v3359_v59, %v1063_v31 }
  0xfc   : > { %v1929_v7 = vmax.f32 %v1897_v62, 0.0  ;;  %v1329_v6 = vadd.f32 %v1297_v19, %v1229_v18  ;;  %v885_v12 = vmul.f32 0.16666667, %v3390_v39  ;;  %v851_v14 = vmul.f32 %v3393_v45, %v3336_v32 }
  0xfd   : > { %v1930_v11 = vmax.f32 %v1898_v4, 0.0  ;;  %v1728_v17 = vadd.f32 %v1696_v10, %v1628_v8  ;;  %v1729_v20 = vadd.f32 %v1697_v38, %v1629_v9  ;;  %v1796_v52 = vmul.f32 %v3362_v60, %v1163_v41  ;;  %v3467_v10 = vpop.f32.mrf.mxu0 }
  0xfe   : > { %v1961_v16 = vmin.f32 %v1929_v7, 6.0  ;;  %v1330_v22 = vadd.f32 %v1298_v44, %v1230_v5  ;;  %961 = vst.msk [vmem:[#allocation2 + $0x90] sm:$0xff] %vm910_vm1, %v885_v12  ;;  %v884_v25 = vmul.f32 0.16666667, %v851_v14  ;;  %v790_v26 = vmax.f32 %v3377_v13, 0.0 }
  0xff   : > { %v1962_v21 = vmin.f32 %v1930_v11, 6.0  ;;  %v1828_v18 = vadd.f32 %v1796_v52, %v1728_v17  ;;  %v1829_v31 = vadd.f32 %v1797_v43, %v1729_v20  ;;  %v757_v39 = vadd.f32 3.0, %v3383_v24 }
 0x100   : > { %v1993_v27 = vmul.f32 %v1961_v16, %v1865_v42  ;;  %960 = vst.msk [vmem:[#allocation2 + $0x88] sm:$0xff] %vm910_vm1, %v884_v25  ;;  %v822_v32 = vmin.f32 %v790_v26, 6.0  ;;  %v760_v45 = vadd.f32 3.0, %v3399_v54  ;;  %v3450_v36 = vadd.f32 %v3296_v35, %v640_v15 }
 0x101   : > { %v1994_v34 = vmul.f32 %v1962_v21, %v1866_v56  ;;  %v1131_v19 = vadd.f32 %v1099_v57, %v1031_v51  ;;  %v1867_v61 = vadd.f32 %v3416_v23, %v1828_v18  ;;  %v1868_v13 = vadd.f32 %v3416_v23, %v1829_v31  ;;  %v650_v31 = vpop.f32.mrf.mxu0 }
 0x102   : > { %v3452_v38 = vmul.f32 0.16666667, %v1993_v27  ;;  %v1429_v43 = vadd.f32 %v1397_v49, %v1329_v6  ;;  %v854_v56 = vmul.f32 %v822_v32, %v3356_v55  ;;  %v789_v62 = vmax.f32 %v757_v39, 0.0 }
 0x103   : > { %v3456_v42 = vmul.f32 0.16666667, %v1994_v34  ;;  %v1132_v0 = vadd.f32 %v1100_v28, %v1032_v53  ;;  %v1430_v3 = vadd.f32 %v1398_v30, %v1330_v22  ;;  %v1899_v4 = vadd.f32 3.0, %v1867_v61 }
 0x104   : > { %v1900_v5 = vadd.f32 3.0, %v1868_v13  ;;  %v1497_v44 = vmul.f32 %v3348_v47, %v1163_v41  ;;  %v887_v7 = vmul.f32 0.16666667, %v854_v56  ;;  %v792_v8 = vmax.f32 %v760_v45, 0.0 }
 0x105   : > { %v3461_v51 = vadd.f32 3.0, %v3450_v36  ;;  %v2058_v57 = vsel %vm910_vm1, %v3452_v38, 0.0  ;;  %v2059_v49 = vsel %vm910_vm1, %v3456_v42, 0.0  ;;  %v1931_v9 = vmax.f32 %v1899_v4, 0.0  ;;  %v1066_v53 = vld [vmem:[#allocation2 + $0x90] sm:$0xff] }
 0x106   : > { %v1932_v55 = vmax.f32 %v1900_v5, 0.0  ;;  %v1231_v28 = vadd.f32 %v1199_v63, %v1131_v19  ;;  %v1529_v30 = vadd.f32 %v1497_v44, %v1429_v43  ;;  %v1166_v11 = vld [vmem:[#allocation2 + $0x91] sm:$0xff]  ;;  %963 = vst.msk [vmem:[#allocation2 + $0xb0] sm:$0xff] %vm910_vm1, %v887_v7  ;;  %v821_v41 = vmin.f32 %v789_v62, 6.0  ;;  %v2925_v44 = vpop.f32.mrf.mxu0 }
 0x107   : > { %v1963_v6 = vmin.f32 %v1931_v9, 6.0  ;;  %v997_v14 = vld [vmem:[#allocation2 + $0x87] sm:$0xff]  ;;  %v998_v16 = vld [vmem:[#allocation2 + $0x8f] sm:$0xff]  ;;  %v1232_v20 = vadd.f32 %v3420_v29, %v1132_v0  ;;  %v1530_v52 = vadd.f32 %v3424_v37, %v1430_v3  ;;  %v2060_v15 = vadd.f32 %v2059_v49, %v2058_v57 }
 0x108   : > { %v1964_v12 = vmin.f32 %v1932_v55, 6.0  ;;  %v1065_v17 = vld [vmem:[#allocation2 + $0x88] sm:$0xff]  ;;  %v1299_v21 = vmul.f32 %v3351_v48, %v997_v14  ;;  %v824_v22 = vmin.f32 %v792_v8, 6.0  ;;  %v791_v63 = vmax.f32 %v3461_v51, 0.0 }
 0x109   : > { %v1995_v25 = vmul.f32 %v1963_v6, %v1867_v61  ;;  %v1033_v26 = vmul.f32 %v3311_v50, %v997_v14  ;;  %v1101_v27 = vmul.f32 %v3315_v58, %v1065_v17  ;;  %v1300_v18 = vmul.f32 %v3351_v48, %v998_v16  ;;  %v1165_v62 = vld [vmem:[#allocation2 + $0x89] sm:$0xff] }
 0x10a   : > { %v1102_v39 = vmul.f32 %v3315_v58, %v1066_v53  ;;  %v3479_v29 = vmul.f32 %v3318_v2, %v1166_v11  ;;  %v1331_v37 = vadd.f32 %v1299_v21, %v1231_v28  ;;  %v853_v34 = vmul.f32 %v821_v41, %v3383_v24 }
 0x10b   : > { %v1996_v32 = vmul.f32 %v1964_v12, %v1868_v13  ;;  %v3482_v45 = vmul.f32 0.16666667, %v1995_v25  ;;  %v1034_v19 = vmul.f32 %v3311_v50, %v998_v16  ;;  %v1399_v61 = vmul.f32 %v3345_v46, %v1065_v17 }
 0x10c   : > { %v1400_v43 = vmul.f32 %v3345_v46, %v1066_v53  ;;  %v3488_v56 = vmul.f32 %v3348_v47, %v1166_v11  ;;  %v1598_v0 = vmul.f32 %v3366_v1, %v997_v14  ;;  %v1599_v3 = vmul.f32 %v3366_v1, %v998_v16 }
 0x10d   : > { %4465 = vst [vmem:[#allocation3_spill] sm:$0xff] %v3482_v45  ;;  %v1699_v4 = vmul.f32 %v3359_v59, %v1066_v53  ;;  %v1133_v24 = vadd.f32 %v1101_v27, %v1033_v26  ;;  %v1332_v13 = vadd.f32 %v1300_v18, %v1232_v20  ;;  %v1431_v5 = vadd.f32 %v1399_v61, %v1331_v37  ;;  %v1068_v26 = vld [vmem:[#allocation2 + $0xb0] sm:$0xff] }
 0x10e   : > { %v2061_v7 = vsel %vm910_vm1, %v3482_v45, 0.0  ;;  %v1630_v8 = vadd.f32 %v1598_v0, %v1529_v30  ;;  %v1631_v51 = vadd.f32 %v1599_v3, %v1530_v52  ;;  %v1698_v57 = vmul.f32 %v3359_v59, %v1065_v17  ;;  %v660_v52 = vpop.f32.mrf.mxu0 }
 0x10f   : > { %v3496_v49 = vmul.f32 0.16666667, %v1996_v32  ;;  %v1799_v9 = vmul.f32 %v3362_v60, %v1166_v11  ;;  %v1134_v55 = vadd.f32 %v1102_v39, %v1034_v19  ;;  %v1201_v28 = vmul.f32 %v3318_v2, %v1165_v62  ;;  %v1168_v32 = vld [vmem:[#allocation2 + $0xb1] sm:$0xff] }
 0x110   : > { %v1499_v53 = vmul.f32 %v3348_v47, %v1165_v62  ;;  %v1730_v41 = vadd.f32 %v1698_v57, %v1630_v8  ;;  %v1731_v6 = vadd.f32 %v1699_v4, %v1631_v51  ;;  %v1798_v12 = vmul.f32 %v3362_v60, %v1165_v62  ;;  %v2928_v3 = vpop.f32.mrf.mxu0 }
 0x111   : > { %4466 = vst [vmem:[#allocation4_spill] sm:$0xff] %v3496_v49  ;;  %v2062_v14 = vadd.f32 %v2061_v7, %v2060_v15  ;;  %v1233_v16 = vadd.f32 %v1201_v28, %v1133_v24  ;;  %v1432_v20 = vadd.f32 %v1400_v43, %v1332_v13  ;;  %v886_v30 = vmul.f32 0.16666667, %v853_v34 }
 0x112   : > { %v3502_v21 = vadd.f32 %v1499_v53, %v1431_v5  ;;  %v1830_v17 = vadd.f32 %v1798_v12, %v1730_v41  ;;  %v1831_v25 = vadd.f32 %v1799_v9, %v1731_v6  ;;  %v856_v11 = vmul.f32 %v824_v22, %v3399_v54 }
 0x113   : > { %962 = vst.msk [vmem:[#allocation2 + $0xa8] sm:$0xff] %vm910_vm1, %v886_v30  ;;  %v823_v27 = vmin.f32 %v791_v63, 6.0  ;;  %v3508_v18 = vadd.f32 %v3467_v10, %v3296_v35  ;;  %v3511_v15 = vadd.f32 %v3296_v35, %v650_v31  ;;  %v3514_v39 = vadd.f32 %v2925_v44, %v3296_v35 }
 0x114   : > { %v1869_v37 = vadd.f32 %v3416_v23, %v1830_v17  ;;  %v1870_v34 = vadd.f32 %v3416_v23, %v1831_v25  ;;  %v889_v54 = vmul.f32 0.16666667, %v856_v11  ;;  %v3519_v22 = vadd.f32 %v3296_v35, %v660_v52 }
 0x115   : > { %v2063_v63 = vsel %vm910_vm1, %v3496_v49, 0.0  ;;  %v855_v10 = vmul.f32 %v823_v27, %v3450_v36  ;;  %v762_v31 = vadd.f32 3.0, %v3508_v18  ;;  %v761_v19 = vadd.f32 3.0, %v3511_v15  ;;  %v670_v27 = vpop.f32.mrf.mxu0 }
 0x116   : > { %v1901_v61 = vadd.f32 3.0, %v1869_v37  ;;  %v1902_v43 = vadd.f32 3.0, %v1870_v34  ;;  %v3527_v62 = vmul.f32 %v3315_v58, %v1068_v26  ;;  %965 = vst.msk [vmem:[#allocation2 + $0xd0] sm:$0xff] %vm910_vm1, %v889_v54  ;;  %v764_v0 = vadd.f32 3.0, %v3514_v39 }
 0x117   : > { %v3532_v4 = vmul.f32 %v3318_v2, %v1168_v32  ;;  %v3535_v24 = vmul.f32 %v3345_v46, %v1068_v26  ;;  %v888_v36 = vmul.f32 0.16666667, %v855_v10  ;;  %v763_v13 = vadd.f32 3.0, %v3519_v22 }
 0x118   : > { %v1933_v5 = vmax.f32 %v1901_v61, 0.0  ;;  %v1934_v44 = vmax.f32 %v1902_v43, 0.0  ;;  %v2064_v7 = vadd.f32 %v2063_v63, %v2062_v14  ;;  %v3539_v8 = vmul.f32 %v3348_v47, %v1168_v32 }
 0x119   : > { %v1701_v51 = vmul.f32 %v3359_v59, %v1068_v26  ;;  %964 = vst.msk [vmem:[#allocation2 + $0xc8] sm:$0xff] %vm910_vm1, %v888_v36  ;;  %v794_v57 = vmax.f32 %v762_v31, 0.0  ;;  %v793_v9 = vmax.f32 %v761_v19, 0.0  ;;  %v3544_v28 = vadd.f32 %v2928_v3, %v3296_v35  ;;  %v2931_v36 = vpop.f32.mrf.mxu0 }
 0x11a   : > { %v1965_v53 = vmin.f32 %v1933_v5, 6.0  ;;  %v1966_v41 = vmin.f32 %v1934_v44, 6.0  ;;  %v1801_v6 = vmul.f32 %v3362_v60, %v1168_v32  ;;  %v999_v12 = vld [vmem:[#allocation2 + $0xa7] sm:$0xff]  ;;  %v1000_v30 = vld [vmem:[#allocation2 + $0xaf] sm:$0xff]  ;;  %v796_v14 = vmax.f32 %v764_v0, 0.0 }
 0x11b   : > { %v1067_v52 = vld [vmem:[#allocation2 + $0xa8] sm:$0xff]  ;;  %v1234_v17 = vadd.f32 %v3479_v29, %v1134_v55  ;;  %v1301_v25 = vmul.f32 %v3351_v48, %v999_v12  ;;  %v1532_v11 = vadd.f32 %v3488_v56, %v1432_v20  ;;  %v795_v26 = vmax.f32 %v763_v13, 0.0 }
 0x11c   : > { %v1997_v54 = vmul.f32 %v1965_v53, %v1869_v37  ;;  %v1035_v63 = vmul.f32 %v3311_v50, %v999_v12  ;;  %v1103_v10 = vmul.f32 %v3315_v58, %v1067_v52  ;;  %v1302_v31 = vmul.f32 %v3351_v48, %v1000_v30  ;;  %v1167_v0 = vld [vmem:[#allocation2 + $0xa9] sm:$0xff] }
 0x11d   : > { %v1998_v32 = vmul.f32 %v1966_v41, %v1870_v34  ;;  %v1333_v19 = vadd.f32 %v1301_v25, %v1233_v16  ;;  %v3553_v61 = vmin.f32 %v794_v57, 6.0  ;;  %v3556_v43 = vadd.f32 3.0, %v3544_v28  ;;  %v1070_v25 = vld [vmem:[#allocation2 + $0xd0] sm:$0xff] }
 0x11e   : > { %v3558_v29 = vmul.f32 0.16666667, %v1997_v54  ;;  %v1401_v56 = vmul.f32 %v3345_v46, %v1067_v52  ;;  %v3561_v55 = vmin.f32 %v793_v9, 6.0  ;;  %v3563_v20 = vmin.f32 %v796_v14, 6.0 }
 0x11f   : > { %v1036_v37 = vmul.f32 %v3311_v50, %v1000_v30  ;;  %v1600_v3 = vmul.f32 %v3366_v1, %v999_v12  ;;  %v1601_v16 = vmul.f32 %v3366_v1, %v1000_v30  ;;  %v3569_v34 = vadd.f32 %v3296_v35, %v670_v27 }
 0x120   : > { %4467 = vst [vmem:[#allocation5_spill] sm:$0xff] %v3558_v29  ;;  %v2065_v13 = vsel %vm910_vm1, %v3558_v29, 0.0  ;;  %v1135_v5 = vadd.f32 %v1103_v10, %v1035_v63  ;;  %v1334_v44 = vadd.f32 %v1302_v31, %v1234_v17  ;;  %v1433_v57 = vadd.f32 %v1401_v56, %v1333_v19  ;;  %v3583_v31 = vld [vmem:[#allocation2 + $0xd1] sm:$0xff] }
 0x121   : > { %v3573_v9 = vmul.f32 0.16666667, %v1998_v32  ;;  %v1632_v53 = vadd.f32 %v1600_v3, %v3502_v21  ;;  %v1633_v41 = vadd.f32 %v1601_v16, %v1532_v11  ;;  %v1700_v14 = vmul.f32 %v3359_v59, %v1067_v52  ;;  %v1001_v21 = vld [vmem:[#allocation2 + $0xc7] sm:$0xff] }
 0x122   : > { %v1203_v12 = vmul.f32 %v3318_v2, %v1167_v0  ;;  %v1501_v30 = vmul.f32 %v3348_v47, %v1167_v0  ;;  %v827_v27 = vmin.f32 %v795_v26, 6.0  ;;  %v3580_v54 = vadd.f32 %v2931_v36, %v3296_v35  ;;  %v1069_v11 = vld [vmem:[#allocation2 + $0xc8] sm:$0xff] }
 0x123   : > { %4468 = vst [vmem:[#allocation6_spill] sm:$0xff] %v3573_v9  ;;  %v2066_v33 = vadd.f32 %v2065_v13, %v2064_v7  ;;  %v1732_v63 = vadd.f32 %v1700_v14, %v1632_v53  ;;  %v1733_v17 = vadd.f32 %v1701_v51, %v1633_v41  ;;  %v1800_v10 = vmul.f32 %v3362_v60, %v1167_v0  ;;  %v1002_v51 = vld [vmem:[#allocation2 + $0xcf] sm:$0xff] }
 0x124   : > { %v1136_v52 = vadd.f32 %v3527_v62, %v1036_v37  ;;  %v1235_v32 = vadd.f32 %v1203_v12, %v1135_v5  ;;  %v1434_v19 = vadd.f32 %v3535_v24, %v1334_v44  ;;  %v1533_v56 = vadd.f32 %v1501_v30, %v1433_v57  ;;  %v3592_v0 = vld [vmem:[#allocation2 + $0xc9] sm:$0xff] }
 0x125   : > { %v1832_v3 = vadd.f32 %v1800_v10, %v1732_v63  ;;  %v1833_v26 = vadd.f32 %v1801_v6, %v1733_v17  ;;  %v2067_v16 = vsel %vm910_vm1, %v3573_v9, 0.0  ;;  %v3590_v7 = vmul.f32 %v3315_v58, %v1070_v25 }
 0x126   : > { %v3596_v36 = vmul.f32 %v3318_v2, %v3583_v31  ;;  %v3599_v62 = vmul.f32 %v3345_v46, %v1070_v25  ;;  %v1037_v24 = vmul.f32 %v3311_v50, %v1001_v21  ;;  %v1105_v6 = vmul.f32 %v3315_v58, %v1069_v11 }
 0x127   : > { %v1871_v37 = vadd.f32 %v3416_v23, %v1832_v3  ;;  %v1872_v13 = vadd.f32 %v3416_v23, %v1833_v26  ;;  %v2068_v5 = vadd.f32 %v2067_v16, %v2066_v33  ;;  %v1703_v44 = vmul.f32 %v3359_v59, %v1070_v25 }
 0x128   : > { %v1803_v57 = vmul.f32 %v3362_v60, %v3583_v31  ;;  %v1038_v53 = vmul.f32 %v3311_v50, %v1002_v51  ;;  %v3611_v41 = vmul.f32 %v3318_v2, %v3592_v0  ;;  %v1534_v14 = vadd.f32 %v3539_v8, %v1434_v19 }
 0x129   : > { %v1903_v12 = vadd.f32 3.0, %v1871_v37  ;;  %v1904_v30 = vadd.f32 3.0, %v1872_v13  ;;  %v1236_v63 = vadd.f32 %v3532_v4, %v1136_v52  ;;  %v1602_v17 = vmul.f32 %v3366_v1, %v1001_v21 }
 0x12a   : > { %v1137_v33 = vadd.f32 %v1105_v6, %v1037_v24  ;;  %v1303_v25 = vmul.f32 %v3351_v48, %v1001_v21  ;;  %v1304_v10 = vmul.f32 %v3351_v48, %v1002_v51  ;;  %v1603_v3 = vmul.f32 %v3366_v1, %v1002_v51 }
 0x12b   : > { %v1935_v26 = vmax.f32 %v1903_v12, 0.0  ;;  %v1936_v16 = vmax.f32 %v1904_v30, 0.0  ;;  %v1634_v9 = vadd.f32 %v1602_v17, %v1533_v56  ;;  %v1702_v29 = vmul.f32 %v3359_v59, %v1069_v11 }
 0x12c   : > { %v1403_v8 = vmul.f32 %v3345_v46, %v1069_v11  ;;  %v1635_v19 = vadd.f32 %v1603_v3, %v1534_v14  ;;  %v858_v4 = vmul.f32 %v3553_v61, %v3508_v18  ;;  %v857_v52 = vmul.f32 %v3561_v55, %v3511_v15 }
 0x12d   : > { %v1967_v24 = vmin.f32 %v1935_v26, 6.0  ;;  %v1968_v21 = vmin.f32 %v1936_v16, 6.0  ;;  %v1734_v6 = vadd.f32 %v1702_v29, %v1634_v9  ;;  %v1802_v51 = vmul.f32 %v3362_v60, %v3592_v0 }
 0x12e   : > { %v1335_v12 = vadd.f32 %v1303_v25, %v1235_v32  ;;  %v1735_v30 = vadd.f32 %v1703_v44, %v1635_v19  ;;  %v891_v56 = vmul.f32 0.16666667, %v858_v4  ;;  %v890_v17 = vmul.f32 0.16666667, %v857_v52 }
 0x12f   : > { %v1999_v49 = vmul.f32 %v1967_v24, %v1871_v37  ;;  %v2000_v45 = vmul.f32 %v1968_v21, %v1872_v13  ;;  %v1834_v11 = vadd.f32 %v1802_v51, %v1734_v6  ;;  %v860_v14 = vmul.f32 %v3563_v20, %v3514_v39  ;;  %v680_v13 = vpop.f32.mrf.mxu0 }
 0x130   : > { %v1835_v18 = vadd.f32 %v1803_v57, %v1735_v30  ;;  %967 = vst.msk [vmem:[#allocation2 + $0xf0] sm:$0xff] %vm910_vm1, %v891_v56  ;;  %966 = vst.msk [vmem:[#allocation2 + $0xe8] sm:$0xff] %vm910_vm1, %v890_v17  ;;  %v859_v15 = vmul.f32 %v827_v27, %v3519_v22  ;;  %v798_v61 = vmax.f32 %v3556_v43, 0.0  ;;  %v765_v29 = vadd.f32 3.0, %v3569_v34 }
 0x131   : > { %v3634_v55 = vmul.f32 0.16666667, %v1999_v49  ;;  %v1336_v9 = vadd.f32 %v1304_v10, %v1236_v63  ;;  %v1873_v32 = vadd.f32 %v3416_v23, %v1834_v11  ;;  %v893_v37 = vmul.f32 0.16666667, %v860_v14  ;;  %v2934_v4 = vpop.f32.mrf.mxu0 }
 0x132   : > { %v1874_v39 = vadd.f32 %v3416_v23, %v1835_v18  ;;  %v892_v20 = vmul.f32 0.16666667, %v859_v15  ;;  %v830_v44 = vmin.f32 %v798_v61, 6.0  ;;  %v797_v57 = vmax.f32 %v765_v29, 0.0  ;;  %v2130_v15 = vld [vmem:[%s4439_s5 + $0x8] sm:$0xff] }
 0x133   : > { %4469 = vst [vmem:[#allocation7_spill] sm:$0xff] %v3634_v55  ;;  %v2069_v25 = vsel %vm910_vm1, %v3634_v55, 0.0  ;;  %v1435_v22 = vadd.f32 %v1403_v8, %v1335_v12  ;;  %v1905_v27 = vadd.f32 3.0, %v1873_v32  ;;  %969 = vst.msk [vmem:[#allocation2 + $0x110] sm:$0xff] %vm910_vm1, %v893_v37  ;;  %v768_v49 = vadd.f32 3.0, %v3580_v54  ;;  %v690_v18 = vpop.f32.mrf.mxu0  ;;  %2951 = vmatpush3.msra.mxu0 %v2130_v15 }
 0x134   : > { %v3642_v43 = vmul.f32 0.16666667, %v2000_v45  ;;  %v1138_v63 = vadd.f32 %v3590_v7, %v1038_v53  ;;  %v1906_v10 = vadd.f32 3.0, %v1874_v39  ;;  %968 = vst.msk [vmem:[#allocation2 + $0x108] sm:$0xff] %vm910_vm1, %v892_v20  ;;  %v862_v3 = vmul.f32 %v830_v44, %v3544_v28 }
 0x135   : > { %v2070_v26 = vadd.f32 %v2069_v25, %v2068_v5  ;;  %v1436_v16 = vadd.f32 %v3599_v62, %v1336_v9  ;;  %v1503_v8 = vmul.f32 %v3348_v47, %v3592_v0  ;;  %v1937_v19 = vmax.f32 %v1905_v27, 0.0 }
 0x136   : > { %4470 = vst [vmem:[#allocation8_spill] sm:$0xff] %v3642_v43  ;;  %v1938_v52 = vmax.f32 %v1906_v10, 0.0  ;;  %v895_v24 = vmul.f32 0.16666667, %v862_v3  ;;  %v829_v21 = vmin.f32 %v797_v57, 6.0  ;;  %v800_v45 = vmax.f32 %v768_v49, 0.0 }
 0x137   : > { %v1504_v7 = vmul.f32 %v3348_v47, %v3583_v31  ;;  %v1237_v53 = vadd.f32 %v3611_v41, %v1137_v33  ;;  %v1535_v6 = vadd.f32 %v1503_v8, %v1435_v22  ;;  %v1969_v51 = vmin.f32 %v1937_v19, 6.0  ;;  %v1003_v28 = vld [vmem:[#allocation2 + $0xe7] sm:$0xff]  ;;  %v1072_v12 = vld [vmem:[#allocation2 + $0xf0] sm:$0xff] }
 0x138   : > { %v1970_v5 = vmin.f32 %v1938_v52, 6.0  ;;  %v2071_v62 = vsel %vm910_vm1, %v3642_v43, 0.0  ;;  %v1004_v0 = vld [vmem:[#allocation2 + $0xef] sm:$0xff]  ;;  %v1238_v56 = vadd.f32 %v3596_v36, %v1138_v63  ;;  %971 = vst.msk [vmem:[#allocation2 + $0x130] sm:$0xff] %vm910_vm1, %v895_v24  ;;  %v3658_v17 = vadd.f32 %v3296_v35, %v680_v13  ;;  %v2129_v36 = vld [vmem:[%s4439_s5] sm:$0xff] }
 0x139   : > { %v1071_v30 = vld [vmem:[#allocation2 + $0xe8] sm:$0xff]  ;;  %v2001_v31 = vmul.f32 %v1969_v51, %v1873_v32  ;;  %v2072_v11 = vadd.f32 %v2071_v62, %v2070_v26  ;;  %v1172_v41 = vld [vmem:[#allocation2 + $0xf1] sm:$0xff]  ;;  %v1536_v33 = vadd.f32 %v1504_v7, %v1436_v16  ;;  %v3661_v14 = vadd.f32 %v2934_v4, %v3296_v35 }
 0x13a   : > { %v2002_v61 = vmul.f32 %v1970_v5, %v1874_v39  ;;  %v1039_v29 = vmul.f32 %v3311_v50, %v1003_v28  ;;  %v3671_v9 = vmul.f32 %v829_v21, %v3569_v34  ;;  %v3673_v32 = vmin.f32 %v800_v45, 6.0  ;;  %v1171_v26 = vld [vmem:[#allocation2 + $0xe9] sm:$0xff] }
 0x13b   : > { %v3675_v37 = vmul.f32 0.16666667, %v2001_v31  ;;  %v1107_v13 = vmul.f32 %v3315_v58, %v1071_v30  ;;  %v1305_v20 = vmul.f32 %v3351_v48, %v1003_v28  ;;  %v1306_v44 = vmul.f32 %v3351_v48, %v1004_v0  ;;  %v1005_v15 = vld [vmem:[#allocation2 + $0x107] sm:$0xff] }
 0x13c   : > { %v4472_v57 = vmov 0.0   ;;  %v1108_v39 = vmul.f32 %v3315_v58, %v1072_v12  ;;  %v1208_v25 = vmul.f32 %v3318_v2, %v1172_v41  ;;  %v3684_v34 = vadd.f32 3.0, %v3658_v17 }
 0x13d   : > { %4471 = vst [vmem:[#allocation9_spill] sm:$0xff] %v3675_v37  ;;  %2952 = vmatprep.subr.mxu0 %v4472_v57  ;;  %v3687_v22 = vadd.f32 %v3296_v35, %v690_v18  ;;  %v2073_v27 = vsel %vm910_vm1, %v3675_v37, 0.0  ;;  %v1406_v49 = vmul.f32 %v3345_v46, %v1072_v12  ;;  %v1040_v63 = vmul.f32 %v3311_v50, %v1004_v0 }
 0x13e   : > { %2953 = vmatpush3.msra.mxu0 %v2129_v36  ;;  %v1337_v10 = vadd.f32 %v1305_v20, %v1237_v53  ;;  %v1705_v3 = vmul.f32 %v3359_v59, %v1072_v12  ;;  %v1405_v16 = vmul.f32 %v3345_v46, %v1071_v30  ;;  %v1604_v8 = vmul.f32 %v3366_v1, %v1003_v28  ;;  %v1074_v53 = vld [vmem:[#allocation2 + $0x110] sm:$0xff] }
 0x13f   : > { %v1605_v19 = vmul.f32 %v3366_v1, %v1004_v0  ;;  %v3697_v35 = vmul.f32 0.16666667, %v2002_v61  ;;  %v2074_v4 = vadd.f32 %v2073_v27, %v2072_v11  ;;  %v1139_v52 = vadd.f32 %v1107_v13, %v1039_v29  ;;  %v1006_v20 = vld [vmem:[#allocation2 + $0x10f] sm:$0xff]  ;;  %2954 = vmatprep.mubr.msk.f32.mxu0 %vm3065_vm3, %v4472_v57  ;;  %2959 = vmatprep.mubr.msk.f32.mxu1 %vm3065_vm3, %v4472_v57 }
 0x140   : > { %v1338_v24 = vadd.f32 %v1306_v44, %v1238_v56  ;;  %v1437_v21 = vadd.f32 %v1405_v16, %v1337_v10  ;;  %v1636_v45 = vadd.f32 %v1604_v8, %v1535_v6  ;;  %v1704_v51 = vmul.f32 %v3359_v59, %v1071_v30  ;;  %v1174_v56 = vld [vmem:[#allocation2 + $0x111] sm:$0xff]  ;;  %v1073_v44 = vld [vmem:[#allocation2 + $0x108] sm:$0xff] }
 0x141   : > { %4473 = vst [vmem:[#allocation10_spill] sm:$0xff] %v3697_v35  ;;  %v1637_v7 = vadd.f32 %v1605_v19, %v1536_v33  ;;  %v1506_v5 = vmul.f32 %v3348_v47, %v1172_v41  ;;  %v1805_v62 = vmul.f32 %v3362_v60, %v1172_v41  ;;  %v1140_v12 = vadd.f32 %v1108_v39, %v1040_v63  ;;  %v1689_v57 = vld [vmem:[#allocation2 + $0x230] sm:$0xff] }
 0x142   : > { %v1207_v28 = vmul.f32 %v3318_v2, %v1171_v26  ;;  %v1505_v0 = vmul.f32 %v3348_v47, %v1171_v26  ;;  %v1736_v31 = vadd.f32 %v1704_v51, %v1636_v45  ;;  %v1804_v11 = vmul.f32 %v3362_v60, %v1171_v26  ;;  %v1173_v45 = vld [vmem:[#allocation2 + $0x109] sm:$0xff] }
 0x143   : > { %v1737_v18 = vadd.f32 %v1705_v3, %v1637_v7  ;;  %v1438_v33 = vadd.f32 %v1406_v49, %v1338_v24  ;;  %v2075_v30 = vsel %vm910_vm1, %v3697_v35, 0.0  ;;  %v1110_v36 = vmul.f32 %v3315_v58, %v1074_v53 }
 0x144   : > { %v1239_v6 = vadd.f32 %v1207_v28, %v1139_v52  ;;  %v1537_v61 = vadd.f32 %v1505_v0, %v1437_v21  ;;  %v1836_v41 = vadd.f32 %v1804_v11, %v1736_v31  ;;  %v3708_v13 = vadd.f32 %v2075_v30, %v2074_v4 }
 0x145   : > { %v1837_v29 = vadd.f32 %v1805_v62, %v1737_v18  ;;  %v3711_v39 = vmul.f32 %v3318_v2, %v1174_v56  ;;  %v1408_v27 = vmul.f32 %v3345_v46, %v1074_v53  ;;  %v3715_v63 = vmul.f32 %v3348_v47, %v1174_v56 }
 0x146   : > { %v1307_v49 = vmul.f32 %v3351_v48, %v1005_v15  ;;  %v1875_v10 = vadd.f32 %v3416_v23, %v1836_v41  ;;  %v1707_v26 = vmul.f32 %v3359_v59, %v1074_v53  ;;  %v1041_v16 = vmul.f32 %v3311_v50, %v1005_v15 }
 0x147   : > { %v1876_v3 = vadd.f32 %v3416_v23, %v1837_v29  ;;  %v1109_v8 = vmul.f32 %v3315_v58, %v1073_v44  ;;  %v1240_v19 = vadd.f32 %v1208_v25, %v1140_v12  ;;  %v1308_v4 = vmul.f32 %v3351_v48, %v1006_v20 }
 0x148   : > { %v1538_v52 = vadd.f32 %v1506_v5, %v1438_v33  ;;  %v1907_v24 = vadd.f32 3.0, %v1875_v10  ;;  %v1606_v7 = vmul.f32 %v3366_v1, %v1005_v15  ;;  %v1607_v51 = vmul.f32 %v3366_v1, %v1006_v20 }
 0x149   : > { %v1908_v21 = vadd.f32 3.0, %v1876_v3  ;;  %v1807_v62 = vmul.f32 %v3362_v60, %v1174_v56  ;;  %v1042_v28 = vmul.f32 %v3311_v50, %v1006_v20  ;;  %v1339_v53 = vadd.f32 %v1307_v49, %v1239_v6 }
 0x14a   : > { %v1706_v0 = vmul.f32 %v3359_v59, %v1073_v44  ;;  %v1939_v31 = vmax.f32 %v1907_v24, 0.0  ;;  %v1638_v25 = vadd.f32 %v1606_v7, %v1537_v61  ;;  %v1639_v12 = vadd.f32 %v1607_v51, %v1538_v52 }
 0x14b   : > { %v1940_v18 = vmax.f32 %v1908_v21, 0.0  ;;  %v1141_v11 = vadd.f32 %v1109_v8, %v1041_v16  ;;  %v1340_v5 = vadd.f32 %v1308_v4, %v1240_v19  ;;  %v1407_v33 = vmul.f32 %v3345_v46, %v1073_v44  ;;  %v1076_v8 = vld [vmem:[#allocation2 + $0x130] sm:$0xff] }
 0x14c   : > { %v1806_v30 = vmul.f32 %v3362_v60, %v1173_v45  ;;  %v1971_v15 = vmin.f32 %v1939_v31, 6.0  ;;  %v1738_v29 = vadd.f32 %v1706_v0, %v1638_v25  ;;  %v1739_v35 = vadd.f32 %v1707_v26, %v1639_v12  ;;  %v1176_v4 = vld [vmem:[#allocation2 + $0x131] sm:$0xff] }
 0x14d   : > { %v1972_v41 = vmin.f32 %v1940_v18, 6.0  ;;  %v1142_v56 = vadd.f32 %v1110_v36, %v1042_v28  ;;  %v1209_v20 = vmul.f32 %v3318_v2, %v1173_v45  ;;  %v1439_v6 = vadd.f32 %v1407_v33, %v1339_v53 }
 0x14e   : > { %v894_v49 = vmul.f32 0.16666667, %v3671_v9  ;;  %v2003_v24 = vmul.f32 %v1971_v15, %v1875_v10  ;;  %v1507_v61 = vmul.f32 %v3348_v47, %v1173_v45  ;;  %v1838_v52 = vadd.f32 %v1806_v30, %v1738_v29 }
 0x14f   : > { %v1839_v16 = vadd.f32 %v1807_v62, %v1739_v35  ;;  %v2004_v19 = vmul.f32 %v1972_v41, %v1876_v3  ;;  %v1241_v44 = vadd.f32 %v1209_v20, %v1141_v11  ;;  %v864_v26 = vmul.f32 %v3673_v32, %v3580_v54  ;;  %v2937_v32 = vpop.f32.mrf.mxu0 }
 0x150   : > { %970 = vst.msk [vmem:[#allocation2 + $0x128] sm:$0xff] %vm910_vm1, %v894_v49  ;;  %v799_v36 = vmax.f32 %v3684_v34, 0.0  ;;  %v3738_v21 = vmul.f32 0.16666667, %v2003_v24  ;;  %v1440_v7 = vadd.f32 %v1408_v27, %v1340_v5  ;;  %v1877_v9 = vadd.f32 %v3416_v23, %v1838_v52 }
 0x151   : > { %v1878_v10 = vadd.f32 %v3416_v23, %v1839_v16  ;;  %v1539_v45 = vadd.f32 %v1507_v61, %v1439_v6  ;;  %v3743_v35 = vmul.f32 %v3315_v58, %v1076_v8  ;;  %v897_v3 = vmul.f32 0.16666667, %v864_v26  ;;  %v700_v24 = vpop.f32.mrf.mxu0 }
 0x152   : > { %4474 = vst [vmem:[#allocation11_spill] sm:$0xff] %v3738_v21  ;;  %v831_v51 = vmin.f32 %v799_v36, 6.0  ;;  %v1909_v62 = vadd.f32 3.0, %v1877_v9  ;;  %v3746_v53 = vmul.f32 %v3318_v2, %v1176_v4  ;;  %v770_v54 = vadd.f32 3.0, %v3661_v14  ;;  %v3775_v36 = vld [vmem:[%s4436_s2] ss:$0 sm:$0xff] }
 0x153   : > { %v1910_v28 = vadd.f32 3.0, %v1878_v10  ;;  %v3749_v34 = vmul.f32 0.16666667, %v2004_v19  ;;  %v2077_v27 = vsel %vm910_vm1, %v3738_v21, 0.0  ;;  %973 = vst.msk [vmem:[#allocation2 + $0x150] sm:$0xff] %vm910_vm1, %v897_v3  ;;  %v769_v0 = vadd.f32 3.0, %v3687_v22 }
 0x154   : > { %v863_v23 = vmul.f32 %v831_v51, %v3658_v17  ;;  %v1941_v31 = vmax.f32 %v1909_v62, 0.0  ;;  %v1410_v25 = vmul.f32 %v3345_v46, %v1076_v8  ;;  %v3758_v12 = vmul.f32 %v3348_v47, %v1176_v4 }
 0x155   : > { %4475 = vst [vmem:[#allocation12_spill] sm:$0xff] %v3749_v34  ;;  %v1942_v18 = vmax.f32 %v1910_v28, 0.0  ;;  %v1709_v11 = vmul.f32 %v3359_v59, %v1076_v8  ;;  %v1809_v5 = vmul.f32 %v3362_v60, %v1176_v4  ;;  %v1242_v33 = vadd.f32 %v3711_v39, %v1142_v56 }
 0x156   : > { %v896_v30 = vmul.f32 0.16666667, %v863_v23  ;;  %v2078_v15 = vadd.f32 %v2077_v27, %v3708_v13  ;;  %v1973_v41 = vmin.f32 %v1941_v31, 6.0  ;;  %v802_v49 = vmax.f32 %v770_v54, 0.0 }
 0x157   : > { %v1974_v17 = vmin.f32 %v1942_v18, 6.0  ;;  %v1007_v29 = vld [vmem:[#allocation2 + $0x127] sm:$0xff]  ;;  %v1008_v20 = vld [vmem:[#allocation2 + $0x12f] sm:$0xff]  ;;  %v2079_v61 = vsel %vm910_vm1, %v3749_v34, 0.0  ;;  %v1540_v16 = vadd.f32 %v3715_v63, %v1440_v7  ;;  %v801_v39 = vmax.f32 %v769_v0, 0.0  ;;  %v2940_v18 = vpop.f32.mrf.mxu0 }
 0x158   : > { %v1075_v6 = vld [vmem:[#allocation2 + $0x128] sm:$0xff]  ;;  %v1309_v52 = vmul.f32 %v3351_v48, %v1007_v29  ;;  %972 = vst.msk [vmem:[#allocation2 + $0x148] sm:$0xff] %vm910_vm1, %v896_v30  ;;  %v2005_v56 = vmul.f32 %v1973_v41, %v1877_v9  ;;  %v1043_v13 = vmul.f32 %v3311_v50, %v1007_v29  ;;  %v1310_v19 = vmul.f32 %v3351_v48, %v1008_v20 }
 0x159   : > { %v1111_v8 = vmul.f32 %v3315_v58, %v1075_v6  ;;  %v2006_v4 = vmul.f32 %v1974_v17, %v1878_v10  ;;  %v3778_v3 = vadd.f32 %v3775_v36, %v2937_v32  ;;  %v3781_v63 = vadd.f32 %v3775_v36, %v700_v24  ;;  %v1175_v10 = vld [vmem:[#allocation2 + $0x129] sm:$0xff] }
 0x15a   : > { %v1341_v26 = vadd.f32 %v1309_v52, %v1241_v44  ;;  %v3783_v7 = vmul.f32 0.16666667, %v2005_v56  ;;  %v2080_v9 = vadd.f32 %v2079_v61, %v2078_v15  ;;  %v1409_v51 = vmul.f32 %v3345_v46, %v1075_v6  ;;  %v1078_v56 = vld [vmem:[#allocation2 + $0x150] sm:$0xff] }
 0x15b   : > { %v3786_v62 = vmin.f32 %v802_v49, 6.0  ;;  %v1044_v44 = vmul.f32 %v3311_v50, %v1008_v20  ;;  %v1608_v28 = vmul.f32 %v3366_v1, %v1007_v29  ;;  %v1609_v54 = vmul.f32 %v3366_v1, %v1008_v20 }
 0x15c   : > { %4476 = vst [vmem:[#allocation13_spill] sm:$0xff] %v3783_v7  ;;  %v833_v27 = vmin.f32 %v801_v39, 6.0  ;;  %v2081_v32 = vsel %vm910_vm1, %v3783_v7, 0.0  ;;  %v1143_v23 = vadd.f32 %v1111_v8, %v1043_v13  ;;  %v1342_v0 = vadd.f32 %v1310_v19, %v1242_v33  ;;  %v3802_v13 = vld [vmem:[#allocation2 + $0x151] sm:$0xff] }
 0x15d   : > { %v1441_v31 = vadd.f32 %v1409_v51, %v1341_v26  ;;  %v3793_v30 = vmul.f32 0.16666667, %v2006_v4  ;;  %v1640_v15 = vadd.f32 %v1608_v28, %v1539_v45  ;;  %v1641_v41 = vadd.f32 %v1609_v54, %v1540_v16 }
 0x15e   : > { %v1708_v17 = vmul.f32 %v3359_v59, %v1075_v6  ;;  %v2082_v49 = vadd.f32 %v2081_v32, %v2080_v9  ;;  %v1211_v24 = vmul.f32 %v3318_v2, %v1175_v10  ;;  %v1509_v29 = vmul.f32 %v3348_v47, %v1175_v10 }
 0x15f   : > { %4477 = vst [vmem:[#allocation14_spill] sm:$0xff] %v3793_v30  ;;  %v1010_v20 = vld [vmem:[#allocation2 + $0x14f] sm:$0xff]  ;;  %v3799_v61 = vadd.f32 3.0, %v3778_v3  ;;  %v1741_v39 = vadd.f32 %v1709_v11, %v1641_v41  ;;  %v1808_v33 = vmul.f32 %v3362_v60, %v1175_v10  ;;  %v3805_v45 = vadd.f32 %v3775_v36, %v2940_v18  ;;  %v1009_v51 = vld [vmem:[#allocation2 + $0x147] sm:$0xff] }
 0x160   : > { %v1740_v52 = vadd.f32 %v1708_v17, %v1640_v15  ;;  %v1144_v6 = vadd.f32 %v3743_v35, %v1044_v44  ;;  %v1243_v16 = vadd.f32 %v1211_v24, %v1143_v23  ;;  %v1442_v8 = vadd.f32 %v1410_v25, %v1342_v0  ;;  %v1077_v10 = vld [vmem:[#allocation2 + $0x148] sm:$0xff] }
 0x161   : > { %v1541_v19 = vadd.f32 %v1509_v29, %v1441_v31  ;;  %v1841_v26 = vadd.f32 %v1809_v5, %v1741_v39  ;;  %v2083_v9 = vsel %vm910_vm1, %v3793_v30, 0.0  ;;  %v1046_v11 = vmul.f32 %v3311_v50, %v1010_v20  ;;  %v3811_v28 = vld [vmem:[#allocation2 + $0x149] sm:$0xff]  ;;  %v3826_v5 = vld [vmem:[%s4438_s4] ss:$0 sm:$0xff] }
 0x162   : > { %v1840_v4 = vadd.f32 %v1808_v33, %v1740_v52  ;;  %v3813_v54 = vadd.f32 %v2083_v9, %v2082_v49  ;;  %v1114_v32 = vmul.f32 %v3315_v58, %v1078_v56  ;;  %v3818_v35 = vmul.f32 %v3318_v2, %v3802_v13 }
 0x163   : > { %v3821_v25 = vmul.f32 %v3345_v46, %v1078_v56  ;;  %v1880_v23 = vadd.f32 %v3826_v5, %v1841_v26  ;;  %v1711_v0 = vmul.f32 %v3359_v59, %v1078_v56  ;;  %v1811_v31 = vmul.f32 %v3362_v60, %v3802_v13 }
 0x164   : > { %v1879_v44 = vadd.f32 %v3826_v5, %v1840_v4  ;;  %v1045_v18 = vmul.f32 %v3311_v50, %v1009_v51  ;;  %v1113_v15 = vmul.f32 %v3315_v58, %v1077_v10  ;;  %v3837_v41 = vmul.f32 %v3318_v2, %v3811_v28 }
 0x165   : > { %v1542_v17 = vadd.f32 %v3758_v12, %v1442_v8  ;;  %v1912_v24 = vadd.f32 3.0, %v1880_v23  ;;  %v3840_v29 = vadd.f32 %v1114_v32, %v1046_v11  ;;  %v1610_v52 = vmul.f32 %v3366_v1, %v1009_v51 }
 0x166   : > { %v1911_v49 = vadd.f32 3.0, %v1879_v44  ;;  %v1244_v39 = vadd.f32 %v3746_v53, %v1144_v6  ;;  %v1311_v33 = vmul.f32 %v3351_v48, %v1009_v51  ;;  %v1312_v56 = vmul.f32 %v3351_v48, %v1010_v20 }
 0x167   : > { %v1611_v4 = vmul.f32 %v3366_v1, %v1010_v20  ;;  %v1944_v9 = vmax.f32 %v1912_v24, 0.0  ;;  %v1642_v30 = vadd.f32 %v1610_v52, %v1541_v19  ;;  %v1710_v7 = vmul.f32 %v3359_v59, %v1077_v10  ;;  %v710_v20 = vpop.f32.mrf.mxu0 }
 0x168   : > { %v1943_v26 = vmax.f32 %v1911_v49, 0.0  ;;  %v1411_v12 = vmul.f32 %v3345_v46, %v1077_v10  ;;  %v866_v11 = vmul.f32 %v3786_v62, %v3661_v14  ;;  %v865_v32 = vmul.f32 %v833_v27, %v3687_v22 }
 0x169   : > { %v1643_v8 = vadd.f32 %v1611_v4, %v1542_v17  ;;  %v1976_v6 = vmin.f32 %v1944_v9, 6.0  ;;  %v1742_v51 = vadd.f32 %v1710_v7, %v1642_v30  ;;  %v1810_v34 = vmul.f32 %v3362_v60, %v3811_v28 }
 0x16a   : > { %v1975_v53 = vmin.f32 %v1943_v26, 6.0  ;;  %v1343_v49 = vadd.f32 %v1311_v33, %v1243_v16  ;;  %v899_v19 = vmul.f32 0.16666667, %v866_v11  ;;  %v898_v52 = vmul.f32 0.16666667, %v865_v32 }
 0x16b   : > { %v1743_v24 = vadd.f32 %v1711_v0, %v1643_v8  ;;  %v2008_v37 = vmul.f32 %v1976_v6, %v1880_v23  ;;  %v1842_v10 = vadd.f32 %v1810_v34, %v1742_v51  ;;  %v804_v17 = vmax.f32 %v3799_v61, 0.0  ;;  %v2943_v8 = vpop.f32.mrf.mxu0 }
 0x16c   : > { %v2007_v21 = vmul.f32 %v1975_v53, %v1879_v44  ;;  %975 = vst.msk [vmem:[#allocation2 + $0x170] sm:$0xff] %vm910_vm1, %v899_v19  ;;  %974 = vst.msk [vmem:[#allocation2 + $0x168] sm:$0xff] %vm910_vm1, %v898_v52  ;;  %v771_v14 = vadd.f32 3.0, %v3781_v63  ;;  %v774_v22 = vadd.f32 3.0, %v3805_v45  ;;  %v3860_v7 = vadd.f32 %v3775_v36, %v710_v20 }
 0x16d   : > { %v1843_v4 = vadd.f32 %v1811_v31, %v1743_v24  ;;  %v1344_v27 = vadd.f32 %v1312_v56, %v1244_v39  ;;  %v1881_v30 = vadd.f32 %v3826_v5, %v1842_v10  ;;  %v836_v34 = vmin.f32 %v804_v17, 6.0  ;;  %v720_v10 = vpop.f32.mrf.mxu0 }
 0x16e   : > { %v3862_v62 = vmul.f32 0.16666667, %v2007_v21  ;;  %v803_v16 = vmax.f32 %v771_v14, 0.0  ;;  %v806_v44 = vmax.f32 %v774_v22, 0.0  ;;  %v773_v23 = vadd.f32 3.0, %v3860_v7 }
 0x16f   : > { %v1882_v61 = vadd.f32 %v3826_v5, %v1843_v4  ;;  %v1145_v31 = vadd.f32 %v1113_v15, %v1045_v18  ;;  %v1913_v33 = vadd.f32 3.0, %v1881_v30  ;;  %v868_v26 = vmul.f32 %v836_v34, %v3778_v3 }
 0x170   : > { %4478 = vst [vmem:[#allocation15_spill] sm:$0xff] %v3862_v62  ;;  %v2085_v0 = vsel %vm910_vm1, %v3862_v62, 0.0  ;;  %v3870_v9 = vmul.f32 0.16666667, %v2008_v37  ;;  %v1443_v21 = vadd.f32 %v1411_v12, %v1343_v49  ;;  %v1511_v39 = vmul.f32 %v3348_v47, %v3811_v28 }
 0x171   : > { %v1914_v56 = vadd.f32 3.0, %v1882_v61  ;;  %v2086_v11 = vadd.f32 %v2085_v0, %v3813_v54  ;;  %v1444_v32 = vadd.f32 %v3821_v25, %v1344_v27  ;;  %v1945_v53 = vmax.f32 %v1913_v33, 0.0 }
 0x172   : > { %4479 = vst [vmem:[#allocation16_spill] sm:$0xff] %v3870_v9  ;;  %v901_v6 = vmul.f32 0.16666667, %v868_v26  ;;  %v835_v20 = vmin.f32 %v803_v16, 6.0  ;;  %v838_v18 = vmin.f32 %v806_v44, 6.0  ;;  %v805_v15 = vmax.f32 %v773_v23, 0.0 }
 0x173   : > { %v1946_v51 = vmax.f32 %v1914_v56, 0.0  ;;  %v1512_v37 = vmul.f32 %v3348_v47, %v3802_v13  ;;  %v1245_v3 = vadd.f32 %v3837_v41, %v1145_v31  ;;  %v1977_v12 = vmin.f32 %v1945_v53, 6.0  ;;  %v1011_v49 = vld [vmem:[#allocation2 + $0x167] sm:$0xff]  ;;  %v1012_v25 = vld [vmem:[#allocation2 + $0x16f] sm:$0xff] }
 0x174   : > { %977 = vst.msk [vmem:[#allocation2 + $0x190] sm:$0xff] %vm910_vm1, %v901_v6  ;;  %v1543_v28 = vadd.f32 %v1511_v39, %v1443_v21  ;;  %v2087_v54 = vsel %vm910_vm1, %v3870_v9, 0.0  ;;  %v1079_v24 = vld [vmem:[#allocation2 + $0x168] sm:$0xff]  ;;  %v1246_v19 = vadd.f32 %v3818_v35, %v3840_v29  ;;  %v3885_v52 = vadd.f32 %v3775_v36, %v2943_v8  ;;  %v1080_v4 = vld [vmem:[#allocation2 + $0x170] sm:$0xff] }
 0x175   : > { %v1978_v13 = vmin.f32 %v1946_v51, 6.0  ;;  %v2009_v17 = vmul.f32 %v1977_v12, %v1881_v30  ;;  %v2088_v41 = vadd.f32 %v2087_v54, %v2086_v11  ;;  %v1180_v14 = vld [vmem:[#allocation2 + $0x171] sm:$0xff]  ;;  %v1544_v22 = vadd.f32 %v1512_v37, %v1444_v32  ;;  %v1179_v8 = vld [vmem:[#allocation2 + $0x169] sm:$0xff] }
 0x176   : > { %v1047_v27 = vmul.f32 %v3311_v50, %v1011_v49  ;;  %v867_v34 = vmul.f32 %v835_v20, %v3781_v63  ;;  %v870_v16 = vmul.f32 %v838_v18, %v3805_v45  ;;  %v837_v44 = vmin.f32 %v805_v15, 6.0  ;;  %v2946_v45 = vpop.f32.mrf.mxu0 }
 0x177   : > { %v3890_v23 = vmul.f32 0.16666667, %v2009_v17  ;;  %v1115_v35 = vmul.f32 %v3315_v58, %v1079_v24  ;;  %v1313_v29 = vmul.f32 %v3351_v48, %v1011_v49  ;;  %v1314_v0 = vmul.f32 %v3351_v48, %v1012_v25 }
 0x178   : > { %v1116_v30 = vmul.f32 %v3315_v58, %v1080_v4  ;;  %v3897_v31 = vmul.f32 %v3318_v2, %v1180_v14  ;;  %v776_v33 = vadd.f32 3.0, %v3885_v52  ;;  %v3901_v63 = vadd.f32 %v3775_v36, %v720_v10  ;;  %v730_v10 = vpop.f32.mrf.mxu0 }
 0x179   : > { %4480 = vst [vmem:[#allocation17_spill] sm:$0xff] %v3890_v23  ;;  %v2010_v26 = vmul.f32 %v1978_v13, %v1882_v61  ;;  %v1414_v21 = vmul.f32 %v3345_v46, %v1080_v4  ;;  %v3905_v39 = vmul.f32 %v3348_v47, %v1180_v14  ;;  %v1048_v56 = vmul.f32 %v3311_v50, %v1012_v25 }
 0x17a   : > { %v1713_v11 = vmul.f32 %v3359_v59, %v1080_v4  ;;  %v1813_v32 = vmul.f32 %v3362_v60, %v1180_v14  ;;  %v1612_v53 = vmul.f32 %v3366_v1, %v1011_v49  ;;  %v1613_v6 = vmul.f32 %v3366_v1, %v1012_v25 }
 0x17b   : > { %v2089_v51 = vsel %vm910_vm1, %v3890_v23, 0.0  ;;  %v1147_v61 = vadd.f32 %v1115_v35, %v1047_v27  ;;  %v1345_v20 = vadd.f32 %v1313_v29, %v1245_v3  ;;  %v1346_v18 = vadd.f32 %v1314_v0, %v1246_v19 }
 0x17c   : > { %v1215_v15 = vmul.f32 %v3318_v2, %v1179_v8  ;;  %v1644_v37 = vadd.f32 %v1612_v53, %v1543_v28  ;;  %v1645_v12 = vadd.f32 %v1613_v6, %v1544_v22  ;;  %v1712_v54 = vmul.f32 %v3359_v59, %v1079_v24  ;;  %v1082_v28 = vld [vmem:[#allocation2 + $0x190] sm:$0xff] }
 0x17d   : > { %v3916_v13 = vmul.f32 0.16666667, %v2010_v26  ;;  %v1148_v17 = vadd.f32 %v1116_v30, %v1048_v56  ;;  %v1413_v49 = vmul.f32 %v3345_v46, %v1079_v24  ;;  %v1513_v25 = vmul.f32 %v3348_v47, %v1179_v8  ;;  %v2949_v30 = vpop.f32.mrf.mxu0 }
 0x17e   : > { %v2090_v4 = vadd.f32 %v2089_v51, %v2088_v41  ;;  %v1744_v14 = vadd.f32 %v1712_v54, %v1644_v37  ;;  %v1745_v23 = vadd.f32 %v1713_v11, %v1645_v12  ;;  %v1812_v3 = vmul.f32 %v3362_v60, %v1179_v8 }
 0x17f   : > { %4481 = vst [vmem:[#allocation18_spill] sm:$0xff] %v3916_v13  ;;  %v1247_v19 = vadd.f32 %v1215_v15, %v1147_v61  ;;  %v1445_v27 = vadd.f32 %v1413_v49, %v1345_v20  ;;  %v1446_v35 = vadd.f32 %v1414_v21, %v1346_v18  ;;  %v900_v22 = vmul.f32 0.16666667, %v867_v34  ;;  %v740_v20 = vpop.f32.mrf.mxu0 }
 0x180   : > { %v1844_v29 = vadd.f32 %v1812_v3, %v1744_v14  ;;  %v1845_v0 = vadd.f32 %v1813_v32, %v1745_v23  ;;  %v903_v53 = vmul.f32 0.16666667, %v870_v16  ;;  %v869_v26 = vmul.f32 %v837_v44, %v3860_v7  ;;  %v1182_v7 = vld [vmem:[#allocation2 + $0x191] sm:$0xff] }
 0x181   : > { %v2091_v24 = vsel %vm910_vm1, %v3916_v13, 0.0  ;;  %976 = vst.msk [vmem:[#allocation2 + $0x188] sm:$0xff] %vm910_vm1, %v900_v22  ;;  %v808_v41 = vmax.f32 %v776_v33, 0.0  ;;  %v775_v56 = vadd.f32 3.0, %v3901_v63  ;;  %v3927_v8 = vadd.f32 %v3775_v36, %v2946_v45 }
 0x182   : > { %v1883_v21 = vadd.f32 %v3826_v5, %v1844_v29  ;;  %v1884_v34 = vadd.f32 %v3826_v5, %v1845_v0  ;;  %v3932_v16 = vmul.f32 %v3315_v58, %v1082_v28  ;;  %979 = vst.msk [vmem:[#allocation2 + $0x1b0] sm:$0xff] %vm910_vm1, %v903_v53  ;;  %v902_v44 = vmul.f32 0.16666667, %v869_v26 }
 0x183   : > { %v1545_v23 = vadd.f32 %v1513_v25, %v1445_v27  ;;  %v840_v11 = vmin.f32 %v808_v41, 6.0  ;;  %v3936_v33 = vadd.f32 %v3775_v36, %v730_v10  ;;  %v3939_v32 = vadd.f32 %v3775_v36, %v2949_v30 }
 0x184   : > { %v1915_v45 = vadd.f32 3.0, %v1883_v21  ;;  %v1916_v6 = vadd.f32 3.0, %v1884_v34  ;;  %v3941_v51 = vadd.f32 %v2091_v24, %v2090_v4  ;;  %978 = vst.msk [vmem:[#allocation2 + $0x1a8] sm:$0xff] %vm910_vm1, %v902_v44  ;;  %v807_v61 = vmax.f32 %v775_v56, 0.0 }
 0x185   : > { %v3945_v18 = vmul.f32 %v3318_v2, %v1182_v7  ;;  %v1416_v15 = vmul.f32 %v3345_v46, %v1082_v28  ;;  %v872_v37 = vmul.f32 %v840_v11, %v3885_v52  ;;  %v778_v12 = vadd.f32 3.0, %v3927_v8 }
 0x186   : > { %v1947_v54 = vmax.f32 %v1915_v45, 0.0  ;;  %v1948_v10 = vmax.f32 %v1916_v6, 0.0  ;;  %v3951_v49 = vmul.f32 %v3348_v47, %v1182_v7  ;;  %v1715_v25 = vmul.f32 %v3359_v59, %v1082_v28 }
 0x187   : > { %v905_v4 = vmul.f32 0.16666667, %v872_v37  ;;  %v777_v14 = vadd.f32 3.0, %v3936_v33  ;;  %v780_v3 = vadd.f32 3.0, %v3939_v32  ;;  %v3957_v27 = vadd.f32 %v3775_v36, %v740_v20 }
 0x188   : > { %v1979_v22 = vmin.f32 %v1947_v54, 6.0  ;;  %v1815_v52 = vmul.f32 %v3362_v60, %v1182_v7  ;;  %v1013_v29 = vld [vmem:[#allocation2 + $0x187] sm:$0xff]  ;;  %v1014_v0 = vld [vmem:[#allocation2 + $0x18f] sm:$0xff]  ;;  %v1248_v26 = vadd.f32 %v3897_v31, %v1148_v17  ;;  %v839_v30 = vmin.f32 %v807_v61, 6.0 }
 0x189   : > { %v1081_v53 = vld [vmem:[#allocation2 + $0x188] sm:$0xff]  ;;  %v1049_v24 = vmul.f32 %v3311_v50, %v1013_v29  ;;  %v1315_v41 = vmul.f32 %v3351_v48, %v1013_v29  ;;  %981 = vst.msk [vmem:[#allocation2 + $0x1d0] sm:$0xff] %vm910_vm1, %v905_v4  ;;  %v810_v56 = vmax.f32 %v778_v12, 0.0  ;;  %v1980_v36 = vmin.f32 %v1948_v10, 6.0 }
 0x18a   : > { %v1117_v28 = vmul.f32 %v3315_v58, %v1081_v53  ;;  %v2011_v44 = vmul.f32 %v1979_v22, %v1883_v21  ;;  %v1316_v11 = vmul.f32 %v3351_v48, %v1014_v0  ;;  %v1546_v7 = vadd.f32 %v3905_v39, %v1446_v35  ;;  %v1181_v45 = vld [vmem:[#allocation2 + $0x189] sm:$0xff] }
 0x18b   : > { %v1347_v6 = vadd.f32 %v1315_v41, %v1247_v19  ;;  %v809_v20 = vmax.f32 %v777_v14, 0.0  ;;  %v812_v31 = vmax.f32 %v780_v3, 0.0  ;;  %v3968_v17 = vadd.f32 3.0, %v3957_v27 }
 0x18c   : > { %v3970_v61 = vmul.f32 0.16666667, %v2011_v44  ;;  %v1050_v37 = vmul.f32 %v3311_v50, %v1014_v0  ;;  %v1415_v54 = vmul.f32 %v3345_v46, %v1081_v53  ;;  %v3975_v12 = vmul.f32 %v839_v30, %v3901_v63  ;;  %v1588_v30 = vld [vmem:[#allocation2 + $0x227] sm:$0xff] }
 0x18d   : > { %v1149_v21 = vadd.f32 %v1117_v28, %v1049_v24  ;;  %v1614_v10 = vmul.f32 %v3366_v1, %v1013_v29  ;;  %v1615_v39 = vmul.f32 %v3366_v1, %v1014_v0  ;;  %v3979_v19 = vmin.f32 %v810_v56, 6.0  ;;  %v1015_v0 = vld [vmem:[#allocation2 + $0x1a7] sm:$0xff] }
 0x18e   : > { %4482 = vst [vmem:[#allocation19_spill] sm:$0xff] %v3970_v61  ;;  %v2012_v35 = vmul.f32 %v1980_v36, %v1884_v34  ;;  %v1217_v4 = vmul.f32 %v3318_v2, %v1181_v45  ;;  %v1348_v14 = vadd.f32 %v1316_v11, %v1248_v26  ;;  %v1447_v3 = vadd.f32 %v1415_v54, %v1347_v6  ;;  %v1016_v6 = vld [vmem:[#allocation2 + $0x1af] sm:$0xff] }
 0x18f   : > { %v2093_v22 = vsel %vm910_vm1, %v3970_v61, 0.0  ;;  %v1646_v41 = vadd.f32 %v1614_v10, %v1545_v23  ;;  %v1647_v44 = vadd.f32 %v1615_v39, %v1546_v7  ;;  %v1714_v63 = vmul.f32 %v3359_v59, %v1081_v53  ;;  %v1083_v23 = vld [vmem:[#allocation2 + $0x1a8] sm:$0xff] }
 0x190   : > { %v1150_v24 = vadd.f32 %v3932_v16, %v1050_v37  ;;  %v1515_v29 = vmul.f32 %v3348_v47, %v1181_v45  ;;  %v3987_v28 = vmin.f32 %v809_v20, 6.0  ;;  %v3989_v34 = vmin.f32 %v812_v31, 6.0  ;;  %v1084_v37 = vld [vmem:[#allocation2 + $0x1b0] sm:$0xff] }
 0x191   : > { %v1249_v56 = vadd.f32 %v1217_v4, %v1149_v21  ;;  %v1746_v26 = vadd.f32 %v1714_v63, %v1646_v41  ;;  %v1747_v36 = vadd.f32 %v1715_v25, %v1647_v44  ;;  %v1814_v11 = vmul.f32 %v3362_v60, %v1181_v45  ;;  %v1184_v21 = vld [vmem:[#allocation2 + $0x1b1] sm:$0xff] }
 0x192   : > { %v3992_v7 = vmul.f32 0.16666667, %v2012_v35  ;;  %v3995_v53 = vadd.f32 %v2093_v22, %v3941_v51  ;;  %v1448_v16 = vadd.f32 %v1416_v15, %v1348_v14  ;;  %v3998_v54 = vmul.f32 %v3366_v1, %v1588_v30  ;;  %v1183_v30 = vld [vmem:[#allocation2 + $0x1a9] sm:$0xff] }
 0x193   : > { %v1547_v20 = vadd.f32 %v1515_v29, %v1447_v3  ;;  %v1846_v31 = vadd.f32 %v1814_v11, %v1746_v26  ;;  %v1847_v10 = vadd.f32 %v1815_v52, %v1747_v36  ;;  %v1317_v25 = vmul.f32 %v3351_v48, %v1015_v0 }
 0x194   : > { %v1051_v45 = vmul.f32 %v3311_v50, %v1015_v0  ;;  %v1119_v39 = vmul.f32 %v3315_v58, %v1083_v23  ;;  %v1250_v35 = vadd.f32 %v3945_v18, %v1150_v24  ;;  %v1318_v51 = vmul.f32 %v3351_v48, %v1016_v6 }
 0x195   : > { %v1885_v15 = vadd.f32 %v3826_v5, %v1846_v31  ;;  %v4007_v4 = vadd.f32 %v3826_v5, %v1847_v10  ;;  %v1120_v14 = vmul.f32 %v3315_v58, %v1084_v37  ;;  %v1349_v3 = vadd.f32 %v1317_v25, %v1249_v56 }
 0x196   : > { %v4011_v52 = vmul.f32 %v3318_v2, %v1184_v21  ;;  %v1717_v22 = vmul.f32 %v3359_v59, %v1084_v37  ;;  %v1548_v41 = vadd.f32 %v3951_v49, %v1448_v16  ;;  %v1616_v44 = vmul.f32 %v3366_v1, %v1015_v0 }
 0x197   : > { %v1917_v18 = vadd.f32 3.0, %v1885_v15  ;;  %v1052_v63 = vmul.f32 %v3311_v50, %v1016_v6  ;;  %v1417_v24 = vmul.f32 %v3345_v46, %v1083_v23  ;;  %v1617_v29 = vmul.f32 %v3366_v1, %v1016_v6 }
 0x198   : > { %v1151_v26 = vadd.f32 %v1119_v39, %v1051_v45  ;;  %v1350_v36 = vadd.f32 %v1318_v51, %v1250_v35  ;;  %v1648_v56 = vadd.f32 %v1616_v44, %v1547_v20  ;;  %v1716_v11 = vmul.f32 %v3359_v59, %v1083_v23  ;;  %v1086_v51 = vld [vmem:[#allocation2 + $0x1d0] sm:$0xff] }
 0x199   : > { %v1918_v31 = vadd.f32 3.0, %v4007_v4  ;;  %v1949_v10 = vmax.f32 %v1917_v18, 0.0  ;;  %v1449_v25 = vadd.f32 %v1417_v24, %v1349_v3  ;;  %v1649_v49 = vadd.f32 %v1617_v29, %v1548_v41 }
 0x19a   : > { %v1418_v0 = vmul.f32 %v3345_v46, %v1084_v37  ;;  %v1518_v16 = vmul.f32 %v3348_v47, %v1184_v21  ;;  %v1748_v61 = vadd.f32 %v1716_v11, %v1648_v56  ;;  %v1816_v13 = vmul.f32 %v3362_v60, %v1183_v30  ;;  %v1788_v11 = vld [vmem:[#allocation2 + $0x229] sm:$0xff] }
 0x19b   : > { %v1817_v9 = vmul.f32 %v3362_v60, %v1184_v21  ;;  %v1219_v6 = vmul.f32 %v3318_v2, %v1183_v30  ;;  %v1517_v20 = vmul.f32 %v3348_v47, %v1183_v30  ;;  %v1749_v45 = vadd.f32 %v1717_v22, %v1649_v49  ;;  %v1186_v21 = vld [vmem:[#allocation2 + $0x1d1] sm:$0xff] }
 0x19c   : > { %v1981_v23 = vmin.f32 %v1949_v10, 6.0  ;;  %v1152_v39 = vadd.f32 %v1120_v14, %v1052_v63  ;;  %v1848_v35 = vadd.f32 %v1816_v13, %v1748_v61  ;;  %v904_v3 = vmul.f32 0.16666667, %v3975_v12 }
 0x19d   : > { %v1950_v41 = vmax.f32 %v1918_v31, 0.0  ;;  %v4028_v37 = vadd.f32 %v1219_v6, %v1151_v26  ;;  %v1450_v44 = vadd.f32 %v1418_v0, %v1350_v36  ;;  %v4030_v18 = vadd.f32 %v1517_v20, %v1449_v25  ;;  %v1789_v31 = vld [vmem:[#allocation2 + $0x231] sm:$0xff] }
 0x19e   : > { %v4033_v24 = vadd.f32 %v3826_v5, %v1848_v35  ;;  %980 = vst.msk [vmem:[#allocation2 + $0x1c8] sm:$0xff] %vm910_vm1, %v904_v3  ;;  %v874_v22 = vmul.f32 %v3979_v19, %v3927_v8  ;;  %v873_v13 = vmul.f32 %v3987_v28, %v3936_v33  ;;  %v876_v61 = vmul.f32 %v3989_v34, %v3939_v32  ;;  %v1589_v19 = vld [vmem:[#allocation2 + $0x22f] sm:$0xff] }
 0x19f   : > { %v1849_v12 = vadd.f32 %v1817_v9, %v1749_v45  ;;  %v1122_v14 = vmul.f32 %v3315_v58, %v1086_v51  ;;  %v811_v63 = vmax.f32 %v3968_v17, 0.0  ;;  %v2013_v30 = vmul.f32 %v1981_v23, %v1885_v15  ;;  %v1688_v28 = vld [vmem:[#allocation2 + $0x228] sm:$0xff] }
 0x1a0   : > { %v1919_v29 = vadd.f32 3.0, %v4033_v24  ;;  %v907_v26 = vmul.f32 0.16666667, %v874_v22  ;;  %v906_v36 = vmul.f32 0.16666667, %v873_v13  ;;  %v4048_v8 = vmul.f32 %v3318_v2, %v1186_v21 }
 0x1a1   : > { %v1420_v33 = vmul.f32 %v3345_v46, %v1086_v51  ;;  %v909_v9 = vmul.f32 0.16666667, %v876_v61  ;;  %v843_v32 = vmin.f32 %v811_v63, 6.0  ;;  %v4051_v17 = vmin.f32 %v1950_v41, 6.0 }
 0x1a2   : > { %v1951_v34 = vmax.f32 %v1919_v29, 0.0  ;;  %v4054_v15 = vmul.f32 %v3348_v47, %v1186_v21  ;;  %v1719_v56 = vmul.f32 %v3359_v59, %v1086_v51  ;;  %983 = vst.msk [vmem:[#allocation2 + $0x1f0] sm:$0xff] %vm910_vm1, %v907_v26  ;;  %982 = vst.msk [vmem:[#allocation2 + $0x1e8] sm:$0xff] %vm910_vm1, %v906_v36  ;;  %v4060_v10 = vmul.f32 %v3362_v60, %v1186_v21 }
 0x1a3   : > { %v1252_v25 = vadd.f32 %v4011_v52, %v1152_v39  ;;  %985 = vst.msk [vmem:[#allocation2 + $0x210] sm:$0xff] %vm910_vm1, %v909_v9  ;;  %v875_v49 = vmul.f32 %v843_v32, %v3957_v27  ;;  %v4066_v0 = vadd.f32 %v3826_v5, %v1849_v12  ;;  %v4068_v6 = vmul.f32 0.16666667, %v2013_v30 }
 0x1a4   : > { %v1550_v20 = vadd.f32 %v1518_v16, %v1450_v44  ;;  %v4071_v45 = vmul.f32 %v3366_v1, %v1589_v19  ;;  %v4074_v23 = vmul.f32 %v3359_v59, %v1688_v28  ;;  %v4077_v39 = vmul.f32 %v3359_v59, %v1689_v57 }
 0x1a5   : > { %v1017_v35 = vld [vmem:[#allocation2 + $0x1c7] sm:$0xff]  ;;  %v1018_v51 = vld [vmem:[#allocation2 + $0x1cf] sm:$0xff]  ;;  %v908_v52 = vmul.f32 0.16666667, %v875_v49  ;;  %v4080_v27 = vmul.f32 %v3362_v60, %v1788_v11  ;;  %v4083_v41 = vmul.f32 %v3362_v60, %v1789_v31  ;;  %v4085_v16 = vmin.f32 %v1951_v34, 6.0 }
 0x1a6   : > { %v1085_v3 = vld [vmem:[#allocation2 + $0x1c8] sm:$0xff]  ;;  %v1053_v44 = vmul.f32 %v3311_v50, %v1017_v35  ;;  %v1054_v21 = vmul.f32 %v3311_v50, %v1018_v51  ;;  %v1319_v12 = vmul.f32 %v3351_v48, %v1017_v35  ;;  %v1320_v63 = vmul.f32 %v3351_v48, %v1018_v51 }
 0x1a7   : > { %v1121_v22 = vmul.f32 %v3315_v58, %v1085_v3  ;;  %v1185_v13 = vld [vmem:[#allocation2 + $0x1c9] sm:$0xff]  ;;  %984 = vst.msk [vmem:[#allocation2 + $0x208] sm:$0xff] %vm910_vm1, %v908_v52  ;;  %v4095_v30 = vadd.f32 3.0, %v4066_v0  ;;  %v1419_v36 = vmul.f32 %v3345_v46, %v1085_v3  ;;  %v1618_v28 = vmul.f32 %v3366_v1, %v1017_v35 }
 0x1a8   : > { %v1221_v61 = vmul.f32 %v3318_v2, %v1185_v13  ;;  %v1154_v26 = vadd.f32 %v1122_v14, %v1054_v21  ;;  %v1519_v9 = vmul.f32 %v3348_v47, %v1185_v13  ;;  %v1351_v32 = vadd.f32 %v1319_v12, %v4028_v37 }
 0x1a9   : > { %v1153_v29 = vadd.f32 %v1121_v22, %v1053_v44  ;;  %v1352_v19 = vadd.f32 %v1320_v63, %v1252_v25  ;;  %v1619_v34 = vmul.f32 %v3366_v1, %v1018_v51  ;;  %v1088_v57 = vld [vmem:[#allocation2 + $0x1f0] sm:$0xff]  ;;  %v1718_v49 = vmul.f32 %v3359_v59, %v1085_v3  ;;  %v1019_v44 = vld [vmem:[#allocation2 + $0x1e7] sm:$0xff] }
 0x1aa   : > { %v1188_v11 = vld [vmem:[#allocation2 + $0x1f1] sm:$0xff]  ;;  %v1818_v52 = vmul.f32 %v3362_v60, %v1185_v13  ;;  %v1124_v14 = vmul.f32 %v3315_v58, %v1088_v57  ;;  %v1451_v21 = vadd.f32 %v1419_v36, %v1351_v32  ;;  %v1650_v62 = vadd.f32 %v1618_v28, %v4030_v18  ;;  %v1087_v12 = vld [vmem:[#allocation2 + $0x1e8] sm:$0xff] }
 0x1ab   : > { %v1253_v31 = vadd.f32 %v1221_v61, %v1153_v29  ;;  %v1452_v22 = vadd.f32 %v1420_v33, %v1352_v19  ;;  %v1651_v37 = vadd.f32 %v1619_v34, %v1550_v20  ;;  %v1020_v25 = vld [vmem:[#allocation2 + $0x1ef] sm:$0xff]  ;;  %v1224_v51 = vmul.f32 %v3318_v2, %v1188_v11 }
 0x1ac   : > { %v1187_v35 = vld [vmem:[#allocation2 + $0x1e9] sm:$0xff]  ;;  %v1422_v63 = vmul.f32 %v3345_v46, %v1088_v57  ;;  %v1522_v61 = vmul.f32 %v3348_v47, %v1188_v11  ;;  %v1721_v3 = vmul.f32 %v3359_v59, %v1088_v57  ;;  %v1551_v13 = vadd.f32 %v1519_v9, %v1451_v21  ;;  %v1488_v21 = vld [vmem:[#allocation2 + $0x211] sm:$0xff] }
 0x1ad   : > { %v1750_v29 = vadd.f32 %v1718_v49, %v1650_v62  ;;  %v1751_v43 = vadd.f32 %v1719_v56, %v1651_v37  ;;  %v1821_v36 = vmul.f32 %v3362_v60, %v1188_v11  ;;  %v1055_v33 = vmul.f32 %v3311_v50, %v1019_v44 }
 0x1ae   : > { %v1056_v18 = vmul.f32 %v3311_v50, %v1020_v25  ;;  %v1123_v20 = vmul.f32 %v3315_v58, %v1087_v12  ;;  %v1223_v32 = vmul.f32 %v3318_v2, %v1187_v35  ;;  %v1254_v28 = vadd.f32 %v4048_v8, %v1154_v26 }
 0x1af   : > { %v1850_v19 = vadd.f32 %v1818_v52, %v1750_v29  ;;  %v1321_v34 = vmul.f32 %v3351_v48, %v1019_v44  ;;  %v1322_v57 = vmul.f32 %v3351_v48, %v1020_v25  ;;  %v1421_v56 = vmul.f32 %v3345_v46, %v1087_v12  ;;  %v1388_v52 = vld [vmem:[#allocation2 + $0x210] sm:$0xff]  ;;  %v1287_v29 = vld [vmem:[#allocation2 + $0x207] sm:$0xff] }
 0x1b0   : > { %v1155_v9 = vadd.f32 %v1123_v20, %v1055_v33  ;;  %v1156_v62 = vadd.f32 %v1124_v14, %v1056_v18  ;;  %v1521_v11 = vmul.f32 %v3348_v47, %v1187_v35  ;;  %v1552_v2 = vadd.f32 %v4054_v15, %v1452_v22 }
 0x1b1   : > { %v4121_v49 = vadd.f32 %v3826_v5, %v1850_v19  ;;  %v1353_v50 = vadd.f32 %v1321_v34, %v1253_v31  ;;  %v1354_v58 = vadd.f32 %v1322_v57, %v1254_v28  ;;  %v1620_v26 = vmul.f32 %v3366_v1, %v1019_v44  ;;  %v1288_v31 = vld [vmem:[#allocation2 + $0x20f] sm:$0xff] }
 0x1b2   : > { %v1255_v8 = vadd.f32 %v1223_v32, %v1155_v9  ;;  %v1621_v37 = vmul.f32 %v3366_v1, %v1020_v25  ;;  %v1720_v14 = vmul.f32 %v3359_v59, %v1087_v12  ;;  %v1820_v19 = vmul.f32 %v3362_v60, %v1187_v35  ;;  %v1387_v28 = vld [vmem:[#allocation2 + $0x208] sm:$0xff] }
 0x1b3   : > { %v1921_v33 = vadd.f32 3.0, %v4121_v49  ;;  %v1453_v18 = vadd.f32 %v1421_v56, %v1353_v50  ;;  %v1454_v20 = vadd.f32 %v1422_v63, %v1354_v58  ;;  %v1487_v34 = vld [vmem:[#allocation2 + $0x209] sm:$0xff]  ;;  %v1652_v15 = vadd.f32 %v1620_v26, %v1551_v13 }
 0x1b4   : > { %v1653_v22 = vadd.f32 %v1621_v37, %v1552_v2  ;;  %v1424_v32 = vmul.f32 %v3345_v46, %v1388_v52  ;;  %v1524_v44 = vmul.f32 %v3348_v47, %v1488_v21  ;;  %v1723_v25 = vmul.f32 %v3359_v59, %v1388_v52 }
 0x1b5   : > { %v1553_v57 = vadd.f32 %v1521_v11, %v1453_v18  ;;  %v1256_v12 = vadd.f32 %v1224_v51, %v1156_v62  ;;  %v1323_v9 = vmul.f32 %v3351_v48, %v1287_v29  ;;  %v1752_v55 = vadd.f32 %v1720_v14, %v1652_v15 }
 0x1b6   : > { %v1324_v63 = vmul.f32 %v3351_v48, %v1288_v31  ;;  %v1423_v35 = vmul.f32 %v3345_v46, %v1387_v28  ;;  %v1523_v56 = vmul.f32 %v3348_v47, %v1487_v34  ;;  %v1622_v13 = vmul.f32 %v3366_v1, %v1287_v29 }
 0x1b7   : > { %v1355_v50 = vadd.f32 %v1323_v9, %v1255_v8  ;;  %v1623_v58 = vmul.f32 %v3366_v1, %v1288_v31  ;;  %v1722_v2 = vmul.f32 %v3359_v59, %v1387_v28  ;;  %v1852_v11 = vadd.f32 %v1820_v19, %v1752_v55 }
 0x1b8   : > { %v1356_v26 = vadd.f32 %v1324_v63, %v1256_v12  ;;  %v1822_v51 = vmul.f32 %v3362_v60, %v1487_v34  ;;  %v1554_v62 = vadd.f32 %v1522_v61, %v1454_v20  ;;  %v1654_v37 = vadd.f32 %v1622_v13, %v1553_v57 }
 0x1b9   : > { %v1455_v52 = vadd.f32 %v1423_v35, %v1355_v50  ;;  %v1753_v14 = vadd.f32 %v1721_v3, %v1653_v22  ;;  %v1823_v48 = vmul.f32 %v3362_v60, %v1488_v21  ;;  %v1851_v47 = vadd.f32 %v4060_v10, %v1751_v43 }
 0x1ba   : > { %v1456_v46 = vadd.f32 %v1424_v32, %v1356_v26  ;;  %v1655_v18 = vadd.f32 %v1623_v58, %v1554_v62  ;;  %v1891_v8 = vadd.f32 %v3826_v5, %v1852_v11  ;;  %v1754_v1 = vadd.f32 %v1722_v2, %v1654_v37 }
 0x1bb   : > { %v1555_v29 = vadd.f32 %v1523_v56, %v1455_v52  ;;  %v1853_v31 = vadd.f32 %v1821_v36, %v1753_v14  ;;  %v1952_v59 = vmax.f32 %v4095_v30, 0.0  ;;  %v1890_v61 = vadd.f32 %v3826_v5, %v1851_v47 }
 0x1bc   : > { %v1556_v55 = vadd.f32 %v1524_v44, %v1456_v46  ;;  %v1755_v19 = vadd.f32 %v1723_v25, %v1655_v18  ;;  %v1923_v20 = vadd.f32 3.0, %v1891_v8  ;;  %v1854_v28 = vadd.f32 %v1822_v51, %v1754_v1 }
 0x1bd   : > { %v1656_v3 = vadd.f32 %v3998_v54, %v1555_v29  ;;  %v1892_v60 = vadd.f32 %v3826_v5, %v1853_v31  ;;  %v1953_v21 = vmax.f32 %v1921_v33, 0.0  ;;  %v1922_v34 = vadd.f32 3.0, %v1890_v61 }
 0x1be   : > { %v1657_v43 = vadd.f32 %v4071_v45, %v1556_v55  ;;  %v1855_v10 = vadd.f32 %v1823_v48, %v1755_v19  ;;  %v2014_v36 = vmul.f32 %v4051_v17, %v4007_v4  ;;  %v1893_v15 = vadd.f32 %v3826_v5, %v1854_v28 }
 0x1bf   : > { %v1756_v30 = vadd.f32 %v4074_v23, %v1656_v3  ;;  %v1924_v22 = vadd.f32 3.0, %v1892_v60  ;;  %v1955_v32 = vmax.f32 %v1923_v20, 0.0  ;;  %v1954_v57 = vmax.f32 %v1922_v34, 0.0 }
 0x1c0   : > { %v1757_v44 = vadd.f32 %v4077_v39, %v1657_v43  ;;  %v1894_v54 = vadd.f32 %v3826_v5, %v1855_v10  ;;  %v1984_v25 = vmin.f32 %v1952_v59, 6.0  ;;  %v2015_v45 = vmul.f32 %v4085_v16, %v4033_v24 }
 0x1c1   : > { %v1856_v33 = vadd.f32 %v4080_v27, %v1756_v30  ;;  %v1925_v12 = vadd.f32 3.0, %v1893_v15  ;;  %v1985_v9 = vmin.f32 %v1953_v21, 6.0  ;;  %v2097_v4 = vsel %vm910_vm1, %v4068_v6, 0.0 }
 0x1c2   : > { %v1857_v17 = vadd.f32 %v4083_v41, %v1757_v44  ;;  %v1956_v23 = vmax.f32 %v1924_v22, 0.0  ;;  %v2095_v39 = vsel %vm910_vm1, %v3992_v7, 0.0  ;;  %v1926_v35 = vadd.f32 3.0, %v1894_v54 }
 0x1c3   : > { %v1895_v63 = vadd.f32 %v3826_v5, %v1856_v33  ;;  %v1986_v56 = vmin.f32 %v1954_v57, 6.0  ;;  %v1987_v50 = vmin.f32 %v1955_v32, 6.0  ;;  %v1957_v16 = vmax.f32 %v1925_v12, 0.0 }
 0x1c4   : > { %v1896_v24 = vadd.f32 %v3826_v5, %v1857_v17  ;;  %v2016_v27 = vmul.f32 %v1984_v25, %v4066_v0  ;;  %v2096_v13 = vadd.f32 %v2095_v39, %v3995_v53  ;;  %v4166_v58 = vmul.f32 0.16666667, %v2015_v45 }
 0x1c5   : > { %v1927_v2 = vadd.f32 3.0, %v1895_v63  ;;  %v2017_v41 = vmul.f32 %v1985_v9, %v4121_v49  ;;  %v4169_v11 = vmul.f32 0.16666667, %v2014_v36  ;;  %v1958_v26 = vmax.f32 %v1926_v35, 0.0 }
 0x1c6   : > { %v1988_v51 = vmin.f32 %v1956_v23, 6.0  ;;  %v2018_v62 = vmul.f32 %v1986_v56, %v1890_v61  ;;  %v2019_v52 = vmul.f32 %v1987_v50, %v1891_v8  ;;  %v1928_v37 = vadd.f32 3.0, %v1896_v24 }
 0x1c7   : > { %v1989_v14 = vmin.f32 %v1957_v16, 6.0  ;;  %v4171_v48 = vmul.f32 0.16666667, %v2016_v27  ;;  %v2098_v5 = vadd.f32 %v2097_v4, %v2096_v13  ;;  %v1959_v46 = vmax.f32 %v1927_v2, 0.0  ;;  %v2206_v2 = vld [vmem:[%s4441_s7] sm:$0xf] }
 0x1c8   : > { %v4173_v0 = vmul.f32 0.16666667, %v2017_v41  ;;  %v2099_v53 = vsel %vm910_vm1, %v4169_v11, 0.0  ;;  %v2101_v49 = vsel %vm910_vm1, %v4166_v58, 0.0  ;;  %v1990_v47 = vmin.f32 %v1958_v26, 6.0  ;;  %2958 = vmatpush3.msk.msra.mxu1 %vm2212_vm4, %v2206_v2 }
 0x1c9   : > { %v2100_v18 = vadd.f32 %v2099_v53, %v2098_v5  ;;  %v2020_v29 = vmul.f32 %v1988_v51, %v1892_v60  ;;  %v2021_v1 = vmul.f32 %v1989_v14, %v1893_v15  ;;  %v4179_v31 = vmul.f32 0.16666667, %v2018_v62  ;;  %v2131_v41 = vld [vmem:[%s4440_s6] sm:$0x1] }
 0x1ca   : > { %v4181_v8 = vmul.f32 0.16666667, %v2019_v52  ;;  %v1960_v55 = vmax.f32 %v1928_v37, 0.0  ;;  %v1991_v19 = vmin.f32 %v1959_v46, 6.0  ;;  %v2103_v61 = vsel %vm910_vm1, %v4171_v48, 0.0 }
 0x1cb   : > { %v2102_v59 = vadd.f32 %v2101_v49, %v2100_v18  ;;  %v2105_v20 = vsel %vm910_vm1, %v4173_v0, 0.0  ;;  %v2022_v28 = vmul.f32 %v1990_v47, %v1894_v54  ;;  %v4187_v21 = vmul.f32 0.16666667, %v2020_v29  ;;  %v2207_v37 = vld [vmem:[%s4442_s8] sm:$0x1] }
 0x1cc   : > { %v4189_v43 = vmul.f32 0.16666667, %v2021_v1  ;;  %v1992_v10 = vmin.f32 %v1960_v55, 6.0  ;;  %v2023_v34 = vmul.f32 %v1991_v19, %v1895_v63  ;;  %v2107_v36 = vsel %vm910_vm1, %v4179_v31, 0.0  ;;  %v2057_v29 = vld [vmem:[%s4443_s9] sm:$0xff]  ;;  %v4484_v55 = vld [vmem:[#allocation4_spill] sm:$0xff] }
 0x1cd   : > { %v2104_v3 = vadd.f32 %v2103_v61, %v2102_v59  ;;  %v2109_v30 = vsel %vm910_vm1, %v4181_v8, 0.0  ;;  %v4195_v22 = vmul.f32 0.16666667, %v2022_v28  ;;  %v2111_v54 = vsel %vm910_vm1, %v4187_v21, 0.0  ;;  %v4485_v19 = vld [vmem:[#allocation5_spill] sm:$0xff]  ;;  %v4486_v61 = vld [vmem:[#allocation6_spill] sm:$0xff] }
 0x1ce   : > { %v2024_v44 = vmul.f32 %v1992_v10, %v1896_v24  ;;  %v4197_v57 = vmul.f32 0.16666667, %v2023_v34  ;;  %v2113_v25 = vsel %vm910_vm1, %v4189_v43, 0.0  ;;  %v4491_v28 = vld [vmem:[#allocation11_spill] sm:$0xff]  ;;  %v4493_v10 = vld [vmem:[#allocation13_spill] sm:$0xff]  ;;  %v4494_v34 = vld [vmem:[#allocation14_spill] sm:$0xff] }
 0x1cf   : > { %v2106_v60 = vadd.f32 %v2105_v20, %v2104_v3  ;;  %v2115_v9 = vsel %vm910_vm1, %v4195_v22, 0.0  ;;  %v4488_v20 = vld [vmem:[#allocation8_spill] sm:$0xff]  ;;  %v4489_v3 = vld [vmem:[#allocation9_spill] sm:$0xff] }
 0x1d0   : > { %v4203_v12 = vmul.f32 0.16666667, %v2024_v44  ;;  %v2117_v4 = vsel %vm910_vm1, %v4197_v57, 0.0  ;;  %v4499_v44 = vld [vmem:[#allocation19_spill] sm:$0xff] }
 0x1d1   : > { %v2108_v15 = vadd.f32 %v2107_v36, %v2106_v60  ;;  %v4492_v60 = vld [vmem:[#allocation12_spill] sm:$0xff]  ;;  %v4495_v36 = vld [vmem:[#allocation15_spill] sm:$0xff] }
 0x1d2   : > { %v2119_v39 = vsel %vm910_vm1, %v4203_v12, 0.0 }
 0x1d3   : > { %v2110_v32 = vadd.f32 %v2109_v30, %v2108_v15  ;;  %v4496_v30 = vld [vmem:[#allocation16_spill] sm:$0xff]  ;;  %v4497_v15 = vld [vmem:[#allocation17_spill] sm:$0xff] }
 0x1d5   : > { %v2112_v45 = vadd.f32 %v2111_v54, %v2110_v32  ;;  %v4498_v32 = vld [vmem:[#allocation18_spill] sm:$0xff] }
 0x1d6   : > { %v3026_v54 = vld [vmem:[%s3145_s24 + $0x18] sm:$0xff] }
 0x1d7   : > { %v2114_v33 = vadd.f32 %v2113_v25, %v2112_v45 }
 0x1d9   : > { %v2116_v17 = vadd.f32 %v2115_v9, %v2114_v33 }
 0x1db   : > { %v2118_v23 = vadd.f32 %v2117_v4, %v2116_v17 }
 0x1dd   : > { %v2120_v63 = vadd.f32 %v2119_v39, %v2118_v23  ;;  %v3028_v23 = vld [vmem:[%s3145_s24 + $0x28] sm:$0xff] }
 0x1df   : > { %v2121_v35 = vrot.slane %v2120_v63, 4 }
 0x1e1   : > { %v2122_v56 = vadd.f32 %v2121_v35, %v2120_v63 }
 0x1e3   : > { %v2123_v50 = vrot.slane %v2122_v56, 2 }
 0x1e5   : > { %v2124_v24 = vadd.f32 %v2123_v50, %v2122_v56  ;;  %v3029_v56 = vld [vmem:[%s3145_s24 + $0x20] sm:$0xff] }
 0x1e7   : > { %v2125_v16 = vrot.slane %v2124_v24, 1 }
 0x1e9   : > { %v2126_v27 = vadd.f32 %v2125_v16, %v2124_v24 }
 0x1eb   : > { %v2128_v13 = vmul.f32 0.00390625, %v2126_v27  ;;  %v3030_v27 = vld [vmem:[%s3145_s24 + $0x38] sm:$0xff] }
 0x1ed   : > { %2955 = vmatmul.mubr.msk.f32.vlgmr.msra.gmra.mxu0 %vm910_vm1, %v2128_v13 }
 0x2ad   : > { %v2201_v26 = vpop.f32.mrf.mxu0 }
 0x2ae   : > { %v2202_v51 = vadd.f32 %v2201_v26, %v2131_v41  ;;  %v3031_v26 = vld [vmem:[%s3145_s24 + $0x30] sm:$0xff] }
 0x2af   : > { %v2956_v62 = vpop.f32.mrf.mxu0 }
 0x2b0   : > { %v2205_v52 = vmax.f32 %v2202_v51, 0.0 }
 0x2b2   : > { %2960 = vmatmul.mubr.msk.f32.vlgmr.msra.gmra.mxu1 %vm2208_vm5, %v2205_v52 }
 0x2b3   : > { %2964 = vmatprep.mubr.msk.f32.mxu1 %vm910_vm1, %v3452_v38  ;;  %v4483_v38 = vld [vmem:[#allocation3_spill] sm:$0xff] }
 0x372   : > { %v2282_v14 = vpop.f32.mrf.mxu1 }
 0x373   : > { %v2283_v5 = vadd.f32 %v2282_v14, %v2207_v37  ;;  %v3032_v37 = vld [vmem:[%s3145_s24 + $0x48] sm:$0xff] }
 0x374   : > { %v2961_v46 = vpop.f32.mrf.mxu1 }
 0x375   : > { %v2286_v53 = vadd.f32 3.0, %v2283_v5 }
 0x377   : > { %v2287_v49 = vmax.f32 %v2286_v53, 0.0  ;;  %v3033_v53 = vld [vmem:[%s3145_s24 + $0x40] sm:$0xff] }
 0x379   : > { %v2288_v18 = vmin.f32 %v2287_v49, 6.0 }
 0x37b   : > { %v2289_v47 = vmul.f32 0.16666667, %v2288_v18 }
 0x37d   : > { %v2293_v1 = vrot.slane %v2289_v47, %v3299_v40  ;;  %v4487_v40 = vld [vmem:[#allocation7_spill] sm:$0xff] }
 0x37f   : > { %v2294_v59 = vmul.f32 %v2293_v1, %v2057_v29  ;;  %v3034_v29 = vld [vmem:[%s3145_s24 + $0x58] sm:$0xff] }
 0x381   : > { %2962 = vmatprep.subr.msk.mxu1 %vm910_vm1, %v2294_v59 }
 0x382   : > { %2963 = vmatpush3.xpose.msk.msra.mxu1 %vm910_vm1, %v2294_v59 }
 0x385   : > { %2965 = vmatmul.mubr.msk.f32.vlgmr.msra.gmra.mxu1 %vm910_vm1, %v3456_v42  ;;  %v4490_v42 = vld [vmem:[#allocation10_spill] sm:$0xff] }
 0x386   : > { %2967 = vmatprep.mubr.msk.f32.mxu1 %vm910_vm1, %v4483_v38 }
 0x389   : > { %2968 = vmatmul.mubr.msk.f32.gmra.mxu1 %vm910_vm1, %v4484_v55  ;;  %v3035_v55 = vld [vmem:[%s3145_s24 + $0x50] sm:$0xff] }
 0x38a   : > { %2970 = vmatprep.mubr.msk.f32.mxu1 %vm910_vm1, %v4485_v19 }
 0x38d   : > { %2971 = vmatmul.mubr.msk.f32.gmra.mxu1 %vm910_vm1, %v4486_v61 }
 0x38e   : > { %2973 = vmatprep.mubr.msk.f32.mxu1 %vm910_vm1, %v4487_v40 }
 0x391   : > { %2974 = vmatmul.mubr.msk.f32.gmra.mxu1 %vm910_vm1, %v4488_v20  ;;  %v3036_v20 = vld [vmem:[%s3145_s24 + $0x68] sm:$0xff] }
 0x392   : > { %2976 = vmatprep.mubr.msk.f32.mxu1 %vm910_vm1, %v4489_v3 }
 0x395   : > { %2977 = vmatmul.mubr.msk.f32.gmra.mxu1 %vm910_vm1, %v4490_v42 }
 0x396   : > { %2979 = vmatprep.mubr.msk.f32.mxu1 %vm910_vm1, %v4491_v28 }
 0x399   : > { %2980 = vmatmul.mubr.msk.f32.gmra.mxu1 %vm910_vm1, %v4492_v60  ;;  %v3037_v60 = vld [vmem:[%s3145_s24 + $0x60] sm:$0xff] }
 0x39a   : > { %2982 = vmatprep.mubr.msk.f32.mxu1 %vm910_vm1, %v4493_v10 }
 0x39d   : > { %2983 = vmatmul.mubr.msk.f32.gmra.mxu1 %vm910_vm1, %v4494_v34 }
 0x39e   : > { %2985 = vmatprep.mubr.msk.f32.mxu1 %vm910_vm1, %v4495_v36 }
 0x3a1   : > { %2986 = vmatmul.mubr.msk.f32.gmra.mxu1 %vm910_vm1, %v4496_v30  ;;  %v3038_v30 = vld [vmem:[%s3145_s24 + $0x78] sm:$0xff] }
 0x3a2   : > { %2988 = vmatprep.mubr.msk.f32.mxu1 %vm910_vm1, %v4497_v15 }
 0x3a5   : > { %2989 = vmatmul.mubr.msk.f32.gmra.mxu1 %vm910_vm1, %v4498_v32 }
 0x3a6   : > { %2991 = vmatprep.mubr.msk.f32.mxu1 %vm910_vm1, %v4499_v44 }
 0x3a9   : > { %2992 = vmatmul.mubr.msk.f32.gmra.mxu1 %vm910_vm1, %v3992_v7  ;;  %v4294_v7 = vld [vmem:[%s4444_s10] ss:$0 sm:$0xff] }
 0x3aa   : > { %2994 = vmatprep.mubr.msk.f32.mxu1 %vm910_vm1, %v4068_v6 }
 0x3ad   : > { %2995 = vmatmul.mubr.msk.f32.gmra.mxu1 %vm910_vm1, %v4169_v11 }
 0x3ae   : > { %2997 = vmatprep.mubr.msk.f32.mxu1 %vm910_vm1, %v4166_v58 }
 0x3b1   : > { %2998 = vmatmul.mubr.msk.f32.gmra.mxu1 %vm910_vm1, %v4171_v48  ;;  %v3024_v48 = vld [vmem:[%s3145_s24 + $0x8] sm:$0xff] }
 0x3b2   : > { %3000 = vmatprep.mubr.msk.f32.mxu1 %vm910_vm1, %v4173_v0 }
 0x3b5   : > { %3001 = vmatmul.mubr.msk.f32.gmra.mxu1 %vm910_vm1, %v4179_v31 }
 0x3b6   : > { %3003 = vmatprep.mubr.msk.f32.mxu1 %vm910_vm1, %v4181_v8 }
 0x3b9   : > { %3004 = vmatmul.mubr.msk.f32.gmra.mxu1 %vm910_vm1, %v4187_v21  ;;  %v3025_v21 = vld [vmem:[%s3145_s24] sm:$0xff] }
 0x3ba   : > { %3006 = vmatprep.mubr.msk.f32.mxu1 %vm910_vm1, %v4189_v43 }
 0x3bd   : > { %3007 = vmatmul.mubr.msk.f32.gmra.mxu1 %vm910_vm1, %v4195_v22 }
 0x3be   : > { %3009 = vmatprep.mubr.msk.f32.mxu1 %vm910_vm1, %v4197_v57 }
 0x3c1   : > { %3010 = vmatmul.mubr.msk.f32.gmra.mxu1 %vm910_vm1, %v4203_v12  ;;  %v3027_v12 = vld [vmem:[%s3145_s24 + $0x10] sm:$0xff] }
 0x445   : > { %v2966_v6 = vpop.f32.mrf.mxu1 }
 0x446   : > { %v2473_v58 = vadd.f32 %v2966_v6, %v4294_v7  ;;  %v3039_v6 = vld [vmem:[%s3145_s24 + $0x70] sm:$0xff] }
 0x447   : > { %v2467_v11 = vpop.f32.mrf.mxu1 }
 0x448   : > { %v2627_v0 = vadd.f32 %v3024_v48, %v2473_v58  ;;  %v2468_v31 = vadd.f32 %v4294_v7, %v2467_v11 }
 0x449   : > { %v2969_v8 = vpop.f32.mrf.mxu1 }
 0x44a   : > { %2659 = vst.msk [vmem:[%s4302_s25 + $0x8] sm:$0xff] %vm427_vm0, %v2627_v0  ;;  %v2626_v43 = vadd.f32 %v3025_v21, %v2468_v31  ;;  %v2483_v22 = vadd.f32 %v2969_v8, %v4294_v7  ;;  %v3040_v0 = vld [vmem:[%s3145_s24 + $0x88] sm:$0xff] }
 0x44b   : > { %v2477_v57 = vpop.f32.mrf.mxu1 }
 0x44c   : > { %2658 = vst.msk [vmem:[%s4302_s25] sm:$0xff] %vm427_vm0, %v2626_v43  ;;  %v2629_v25 = vadd.f32 %v3026_v54, %v2483_v22  ;;  %v2478_v45 = vadd.f32 %v4294_v7, %v2477_v57  ;;  %v3041_v43 = vld [vmem:[%s3145_s24 + $0x80] sm:$0xff] }
 0x44d   : > { %v2972_v33 = vpop.f32.mrf.mxu1 }
 0x44e   : > { %2661 = vst.msk [vmem:[%s4302_s25 + $0x18] sm:$0xff] %vm427_vm0, %v2629_v25  ;;  %v2628_v9 = vadd.f32 %v3027_v12, %v2478_v45  ;;  %v2493_v4 = vadd.f32 %v2972_v33, %v4294_v7  ;;  %v3042_v25 = vld [vmem:[%s3145_s24 + $0x98] sm:$0xff] }
 0x44f   : > { %v2487_v17 = vpop.f32.mrf.mxu1 }
 0x450   : > { %2660 = vst.msk [vmem:[%s4302_s25 + $0x10] sm:$0xff] %vm427_vm0, %v2628_v9  ;;  %v2631_v39 = vadd.f32 %v3028_v23, %v2493_v4  ;;  %v2488_v63 = vadd.f32 %v4294_v7, %v2487_v17  ;;  %v3043_v9 = vld [vmem:[%s3145_s24 + $0x90] sm:$0xff] }
 0x451   : > { %v2975_v35 = vpop.f32.mrf.mxu1 }
 0x452   : > { %2663 = vst.msk [vmem:[%s4302_s25 + $0x28] sm:$0xff] %vm427_vm0, %v2631_v39  ;;  %v2630_v50 = vadd.f32 %v3029_v56, %v2488_v63  ;;  %v2503_v24 = vadd.f32 %v2975_v35, %v4294_v7  ;;  %v3044_v39 = vld [vmem:[%s3145_s24 + $0xa8] sm:$0xff] }
 0x453   : > { %v2497_v16 = vpop.f32.mrf.mxu1 }
 0x454   : > { %2662 = vst.msk [vmem:[%s4302_s25 + $0x20] sm:$0xff] %vm427_vm0, %v2630_v50  ;;  %v2633_v13 = vadd.f32 %v3030_v27, %v2503_v24  ;;  %v2498_v2 = vadd.f32 %v4294_v7, %v2497_v16  ;;  %v3045_v50 = vld [vmem:[%s3145_s24 + $0xa0] sm:$0xff] }
 0x455   : > { %v2978_v41 = vpop.f32.mrf.mxu1 }
 0x456   : > { %2665 = vst.msk [vmem:[%s4302_s25 + $0x38] sm:$0xff] %vm427_vm0, %v2633_v13  ;;  %v2632_v51 = vadd.f32 %v3031_v26, %v2498_v2  ;;  %v2513_v62 = vadd.f32 %v2978_v41, %v4294_v7  ;;  %v3046_v13 = vld [vmem:[%s3145_s24 + $0xb8] sm:$0xff] }
 0x457   : > { %v2507_v52 = vpop.f32.mrf.mxu1 }
 0x458   : > { %2664 = vst.msk [vmem:[%s4302_s25 + $0x30] sm:$0xff] %vm427_vm0, %v2632_v51  ;;  %v2635_v14 = vadd.f32 %v3032_v37, %v2513_v62  ;;  %v2508_v5 = vadd.f32 %v4294_v7, %v2507_v52  ;;  %v3047_v51 = vld [vmem:[%s3145_s24 + $0xb0] sm:$0xff] }
 0x459   : > { %v2981_v46 = vpop.f32.mrf.mxu1 }
 0x45a   : > { %2667 = vst.msk [vmem:[%s4302_s25 + $0x48] sm:$0xff] %vm427_vm0, %v2635_v14  ;;  %v2634_v49 = vadd.f32 %v3033_v53, %v2508_v5  ;;  %v2523_v18 = vadd.f32 %v2981_v46, %v4294_v7  ;;  %v3048_v14 = vld [vmem:[%s3145_s24 + $0xc8] sm:$0xff] }
 0x45b   : > { %v2517_v47 = vpop.f32.mrf.mxu1 }
 0x45c   : > { %2666 = vst.msk [vmem:[%s4302_s25 + $0x40] sm:$0xff] %vm427_vm0, %v2634_v49  ;;  %v2637_v1 = vadd.f32 %v3034_v29, %v2523_v18  ;;  %v2518_v59 = vadd.f32 %v4294_v7, %v2517_v47  ;;  %v3049_v49 = vld [vmem:[%s3145_s24 + $0xc0] sm:$0xff] }
 0x45d   : > { %v2984_v38 = vpop.f32.mrf.mxu1 }
 0x45e   : > { %2669 = vst.msk [vmem:[%s4302_s25 + $0x58] sm:$0xff] %vm427_vm0, %v2637_v1  ;;  %v2636_v19 = vadd.f32 %v3035_v55, %v2518_v59  ;;  %v2533_v61 = vadd.f32 %v2984_v38, %v4294_v7  ;;  %v3050_v1 = vld [vmem:[%s3145_s24 + $0xd8] sm:$0xff] }
 0x45f   : > { %v2527_v40 = vpop.f32.mrf.mxu1 }
 0x460   : > { %2668 = vst.msk [vmem:[%s4302_s25 + $0x50] sm:$0xff] %vm427_vm0, %v2636_v19  ;;  %v2639_v3 = vadd.f32 %v3036_v20, %v2533_v61  ;;  %v2528_v42 = vadd.f32 %v4294_v7, %v2527_v40  ;;  %v3051_v19 = vld [vmem:[%s3145_s24 + $0xd0] sm:$0xff] }
 0x461   : > { %v2987_v28 = vpop.f32.mrf.mxu1 }
 0x462   : > { %2671 = vst.msk [vmem:[%s4302_s25 + $0x68] sm:$0xff] %vm427_vm0, %v2639_v3  ;;  %v2638_v10 = vadd.f32 %v3037_v60, %v2528_v42  ;;  %v2543_v34 = vadd.f32 %v2987_v28, %v4294_v7  ;;  %v3052_v3 = vld [vmem:[%s3145_s24 + $0xe8] sm:$0xff] }
 0x463   : > { %v2537_v36 = vpop.f32.mrf.mxu1 }
 0x464   : > { %2670 = vst.msk [vmem:[%s4302_s25 + $0x60] sm:$0xff] %vm427_vm0, %v2638_v10  ;;  %v2641_v15 = vadd.f32 %v3038_v30, %v2543_v34  ;;  %v2538_v32 = vadd.f32 %v4294_v7, %v2537_v36  ;;  %v3053_v10 = vld [vmem:[%s3145_s24 + $0xe0] sm:$0xff] }
 0x465   : > { %v2990_v44 = vpop.f32.mrf.mxu1 }
 0x466   : > { %2673 = vst.msk [vmem:[%s4302_s25 + $0x78] sm:$0xff] %vm427_vm0, %v2641_v15  ;;  %v2640_v58 = vadd.f32 %v3039_v6, %v2538_v32  ;;  %v2553_v11 = vadd.f32 %v2990_v44, %v4294_v7  ;;  %v3054_v15 = vld [vmem:[%s3145_s24 + $0xf8] sm:$0xff]  ;;  %v3055_v6 = vld [vmem:[%s3145_s24 + $0xf0] sm:$0xff] }
 0x467   : > { %v2547_v48 = vpop.f32.mrf.mxu1 }
 0x468   : > { %2672 = vst.msk [vmem:[%s4302_s25 + $0x70] sm:$0xff] %vm427_vm0, %v2640_v58  ;;  %v2643_v31 = vadd.f32 %v3040_v0, %v2553_v11  ;;  %v2548_v8 = vadd.f32 %v4294_v7, %v2547_v48 }
 0x469   : > { %v2993_v21 = vpop.f32.mrf.mxu1 }
 0x46a   : > { %2675 = vst.msk [vmem:[%s4302_s25 + $0x88] sm:$0xff] %vm427_vm0, %v2643_v31  ;;  %v2642_v22 = vadd.f32 %v3041_v43, %v2548_v8  ;;  %v2563_v57 = vadd.f32 %v2993_v21, %v4294_v7 }
 0x46b   : > { %v2557_v54 = vpop.f32.mrf.mxu1 }
 0x46c   : > { %2674 = vst.msk [vmem:[%s4302_s25 + $0x80] sm:$0xff] %vm427_vm0, %v2642_v22  ;;  %v2645_v45 = vadd.f32 %v3042_v25, %v2563_v57  ;;  %v2558_v33 = vadd.f32 %v4294_v7, %v2557_v54 }
 0x46d   : > { %v2996_v12 = vpop.f32.mrf.mxu1 }
 0x46e   : > { %2677 = vst.msk [vmem:[%s4302_s25 + $0x98] sm:$0xff] %vm427_vm0, %v2645_v45  ;;  %v2644_v4 = vadd.f32 %v3043_v9, %v2558_v33  ;;  %v2573_v17 = vadd.f32 %v2996_v12, %v4294_v7 }
 0x46f   : > { %v2567_v23 = vpop.f32.mrf.mxu1 }
 0x470   : > { %2676 = vst.msk [vmem:[%s4302_s25 + $0x90] sm:$0xff] %vm427_vm0, %v2644_v4  ;;  %v2647_v63 = vadd.f32 %v3044_v39, %v2573_v17  ;;  %v2568_v35 = vadd.f32 %v4294_v7, %v2567_v23 }
 0x471   : > { %v2999_v56 = vpop.f32.mrf.mxu1 }
 0x472   : > { %2679 = vst.msk [vmem:[%s4302_s25 + $0xa8] sm:$0xff] %vm427_vm0, %v2647_v63  ;;  %v2646_v24 = vadd.f32 %v3045_v50, %v2568_v35  ;;  %v2583_v16 = vadd.f32 %v2999_v56, %v4294_v7 }
 0x473   : > { %v2577_v27 = vpop.f32.mrf.mxu1 }
 0x474   : > { %2678 = vst.msk [vmem:[%s4302_s25 + $0xa0] sm:$0xff] %vm427_vm0, %v2646_v24  ;;  %v2649_v2 = vadd.f32 %v3046_v13, %v2583_v16  ;;  %v2578_v41 = vadd.f32 %v4294_v7, %v2577_v27 }
 0x475   : > { %v3002_v26 = vpop.f32.mrf.mxu1 }
 0x476   : > { %2681 = vst.msk [vmem:[%s4302_s25 + $0xb8] sm:$0xff] %vm427_vm0, %v2649_v2  ;;  %v2648_v62 = vadd.f32 %v3047_v51, %v2578_v41  ;;  %v2593_v52 = vadd.f32 %v3002_v26, %v4294_v7 }
 0x477   : > { %v2587_v37 = vpop.f32.mrf.mxu1 }
 0x478   : > { %2680 = vst.msk [vmem:[%s4302_s25 + $0xb0] sm:$0xff] %vm427_vm0, %v2648_v62  ;;  %v2651_v5 = vadd.f32 %v3048_v14, %v2593_v52  ;;  %v2588_v46 = vadd.f32 %v4294_v7, %v2587_v37 }
 0x479   : > { %v3005_v53 = vpop.f32.mrf.mxu1 }
 0x47a   : > { %2683 = vst.msk [vmem:[%s4302_s25 + $0xc8] sm:$0xff] %vm427_vm0, %v2651_v5  ;;  %v2650_v18 = vadd.f32 %v3049_v49, %v2588_v46  ;;  %v2603_v47 = vadd.f32 %v3005_v53, %v4294_v7 }
 0x47b   : > { %v2597_v29 = vpop.f32.mrf.mxu1 }
 0x47c   : > { %2682 = vst.msk [vmem:[%s4302_s25 + $0xc0] sm:$0xff] %vm427_vm0, %v2650_v18  ;;  %v2653_v59 = vadd.f32 %v3050_v1, %v2603_v47  ;;  %v2598_v38 = vadd.f32 %v4294_v7, %v2597_v29 }
 0x47d   : > { %v3008_v55 = vpop.f32.mrf.mxu1 }
 0x47e   : > { %2685 = vst.msk [vmem:[%s4302_s25 + $0xd8] sm:$0xff] %vm427_vm0, %v2653_v59  ;;  %v2652_v61 = vadd.f32 %v3051_v19, %v2598_v38  ;;  %v2613_v40 = vadd.f32 %v3008_v55, %v4294_v7 }
 0x47f   : > { %v2607_v20 = vpop.f32.mrf.mxu1 }
 0x480   : > { %2684 = vst.msk [vmem:[%s4302_s25 + $0xd0] sm:$0xff] %vm427_vm0, %v2652_v61  ;;  %v2655_v42 = vadd.f32 %v3052_v3, %v2613_v40  ;;  %v2608_v28 = vadd.f32 %v4294_v7, %v2607_v20 }
 0x481   : > { %v3011_v60 = vpop.f32.mrf.mxu1 }
 0x482   : > { %2687 = vst.msk [vmem:[%s4302_s25 + $0xe8] sm:$0xff] %vm427_vm0, %v2655_v42  ;;  %v2654_v34 = vadd.f32 %v3053_v10, %v2608_v28  ;;  %v2623_v36 = vadd.f32 %v3011_v60, %v4294_v7 }
 0x483   : > { %v2617_v30 = vpop.f32.mrf.mxu1 }
 0x484   : > { %2686 = vst.msk [vmem:[%s4302_s25 + $0xe0] sm:$0xff] %vm427_vm0, %v2654_v34  ;;  %v2657_v32 = vadd.f32 %v3054_v15, %v2623_v36  ;;  %v2618_v44 = vadd.f32 %v4294_v7, %v2617_v30 }
 0x486   : > { %2689 = vst.msk [vmem:[%s4302_s25 + $0xf8] sm:$0xff] %vm427_vm0, %v2657_v32  ;;  %v2656_v58 = vadd.f32 %v3055_v6, %v2618_v44 }
 0x488   : > { %2688 = vst.msk [vmem:[%s4302_s25 + $0xf0] sm:$0xff] %vm427_vm0, %v2656_v58 }
 0x489 PF: > { %s21_s17 = sadd.s32 1, %s3062_s17  }
 0x48a   : > { %p18_p4 = scmp.ge.s32.totalorder %s21_s17, 4  }
 0x48c   :  { %20 = sbr.rel (!%p18_p4) target bundleno = 1 (0x1), region = 97 }

</bundles_post_ra>
